<compile_context>
chip_gen: v6e
topology: v6e:2x2x1
jax: 0.10.0
libtpu: 0.0.40
codegen_flags: <defaults>
</compile_context>

<pallas_src>
import functools

import jax
import jax.numpy as jnp
from jax.experimental import pallas as pl
from jax.experimental.pallas import tpu as pltpu

BN_EPS = 1e-5
GIN_EPS = 0.0            # torch_geometric GINConv default (train_eps=False)
C_PAD = 128              # padded channel width (lane-dense)
CLASS_PAD = 128          # padded classifier width (lane-dense output store)
N_PAD_MULTIPLE = 128     # pad the node/contraction dim to full MXU depth

# f32 row-slab layout (all rows are [1, C_PAD]):
ROWS_PER_LAYER = 8       # b1, g1, be1, b2, g2, be2, pad, pad  (8-sublane aligned per layer)
BC_ROW = 24              # classifier bias
INV_ROW = 32             # first of g_pad pre-broadcast 1/count rows


# ----------------------------------- kernel -----------------------------------


def _gin_kernel(x_ref, a_ref, p_ref, w_ref, r_ref, out_ref, *, n_real):
    """Whole forward pass, everything resident in VMEM (toy/small-graph regime)."""
    n_pad, c_pad = x_ref.shape
    g_pad = p_ref.shape[0]
    inv_n = 1.0 / float(n_real)

    # Node-row mask for BN statistics (excludes bias-carrying padded rows). Built once,
    # full [n_pad, c_pad] so no broadcast is re-materialized per BN call.
    if n_real == n_pad:
        mask = None
    else:
        rows = jax.lax.broadcasted_iota(jnp.int32, (n_pad, c_pad), 0)
        mask = (rows < n_real).astype(jnp.float32)

    adj = a_ref[...]          # bf16, (1 + eps) * I already folded in

    def bn_relu(z, g_idx, be_idx):
        # Training-mode BatchNorm1d + ReLU with fused affine; stats in f32.
        zm = z if mask is None else z * mask
        s1 = jnp.sum(zm, axis=0, keepdims=True)
        s2 = jnp.sum(zm * z, axis=0, keepdims=True)           # mask is exactly 0/1
        mean = s1 * inv_n
        var = jnp.maximum(s2 * inv_n - mean * mean, 0.0)
        scale = r_ref[g_idx:g_idx + 1, :] * jax.lax.rsqrt(var + BN_EPS)   # rsqrt -> EUP slot
        shift = r_ref[be_idx:be_idx + 1, :] - mean * scale
        return jnp.maximum(z * scale + shift, 0.0)            # 3 VALU passes per element

    def gin_layer(h_bf16, layer):
        w1 = w_ref[2 * layer]                                 # [c_pad, c_pad] bf16
        w2 = w_ref[2 * layer + 1]
        r0 = ROWS_PER_LAYER * layer
        # GINConv: nn((1+eps) x_i + sum_j x_j) == nn(A' @ h); bf16 operands, f32 accumulation.
        s = jnp.dot(adj, h_bf16, preferred_element_type=jnp.float32)
        z = jnp.dot(s.astype(jnp.bfloat16), w1,
                    preferred_element_type=jnp.float32) + r_ref[r0:r0 + 1, :]
        z = bn_relu(z, r0 + 1, r0 + 2)
        z = jnp.dot(z.astype(jnp.bfloat16), w2,
                    preferred_element_type=jnp.float32) + r_ref[r0 + 3:r0 + 4, :]
        z = bn_relu(z, r0 + 4, r0 + 5)
        return z.astype(jnp.bfloat16)

    h = x_ref[...]                                            # bf16 [n_pad, c_pad]
    h = gin_layer(h, 0)
    h = gin_layer(h, 1)
    h = gin_layer(h, 2)

    # global_mean_pool: exact 0/1 one-hot matmul, pre-broadcast f32 1/count rows.
    pooled = (jnp.dot(p_ref[...], h, preferred_element_type=jnp.float32)
              * r_ref[INV_ROW:INV_ROW + g_pad, :])
    # classifier -> lane-dense [g_pad, 128] full, unmasked store.
    out_ref[...] = jnp.dot(pooled.astype(jnp.bfloat16), w_ref[6],
                           preferred_element_type=jnp.float32) + r_ref[BC_ROW:BC_ROW + 1, :]


def gin_classification_forward(x_p, adj_p, pool_p, w_slab, row_slab,
                               *, n_real, num_graphs, num_classes):
    """Inputs already packed / padded / cast; returns logits [num_graphs, num_classes] (f32)."""
    g_pad = pool_p.shape[0]

    in_bytes = sum(int(a.size) * a.dtype.itemsize
                   for a in (x_p, adj_p, pool_p, w_slab, row_slab))
    out_bytes = g_pad * CLASS_PAD * 4
    scratch_bytes = 10 * x_p.shape[0] * C_PAD * 4             # generous live-intermediate bound
    vmem_limit = int(min(max(2 * (in_bytes + out_bytes) + scratch_bytes, 32 << 20), 64 << 20))

    kernel = functools.partial(_gin_kernel, n_real=n_real)
    out = pl.pallas_call(
        kernel,
        out_shape=jax.ShapeDtypeStruct((g_pad, CLASS_PAD), jnp.float32),
        in_specs=[pl.BlockSpec(memory_space=pltpu.MemorySpace.VMEM)] * 5,
        out_specs=pl.BlockSpec(memory_space=pltpu.MemorySpace.VMEM),
        compiler_params=pltpu.CompilerParams(vmem_limit_bytes=vmem_limit),
    )(x_p, adj_p, pool_p, w_slab, row_slab)
    return out[:num_graphs, :num_classes]


# ------------------------------ glue / parameters ------------------------------


def _round_up(v, m):
    return ((v + m - 1) // m) * m


def _pad2(a, rows, cols, fill=0.0):
    out = jnp.full((rows, cols), fill, dtype=a.dtype)
    return out.at[: a.shape[0], : a.shape[1]].set(a)


def _linear_params(key, fan_in, fan_out):
    """PyTorch nn.Linear default init: U(-1/sqrt(fan_in), 1/sqrt(fan_in)); weight stored [in,out]."""
    k1, k2 = jax.random.split(key)
    bound = 1.0 / float(fan_in) ** 0.5
    w = jax.random.uniform(k1, (fan_out, fan_in), jnp.float32, -bound, bound)
    b = jax.random.uniform(k2, (fan_out,), jnp.float32, -bound, bound)
    return w.T, b.reshape(1, fan_out)


def _bn_params(c):
    return jnp.ones((1, c), jnp.float32), jnp.zeros((1, c), jnp.float32)


def make_params(key, in_c, hid_c, out_c, n_classes):
    """Raw (unpadded, f32) parameters matching nn.Module defaults."""
    keys = jax.random.split(key, 7)
    dims = [(in_c, hid_c), (hid_c, hid_c), (hid_c, out_c)]
    params = []
    for i, (ci, co) in enumerate(dims):
        w1, b1 = _linear_params(keys[2 * i], ci, co)
        g1, be1 = _bn_params(co)
        w2, b2 = _linear_params(keys[2 * i + 1], co, co)
        g2, be2 = _bn_params(co)
        params += [w1, b1, g1, be1, w2, b2, g2, be2]
    wc, bc = _linear_params(keys[6], out_c, n_classes)
    params += [wc, bc]
    return params


def pack_params(raw, inv_counts, *, c_pad, g_pad):
    """Pack the 26 parameter arrays into one bf16 weight slab and one f32 row slab.

    Zero padding keeps all padded channel lanes exactly 0 through every layer
    (zero weight columns/bias -> zero activations -> zero scale/shift).
    """
    w_list = []
    for i in range(3):
        w_list += [_pad2(raw[8 * i + 0], c_pad, c_pad),        # w1 of layer i
                   _pad2(raw[8 * i + 4], c_pad, c_pad)]        # w2 of layer i
    w_list.append(_pad2(raw[-2], c_pad, c_pad))                # wc
    w_slab = jnp.stack(w_list).astype(jnp.bfloat16)            # [7, c_pad, c_pad]

    rows = jnp.zeros((INV_ROW + g_pad, c_pad), jnp.float32)
    for i in range(3):
        _, b1, g1, be1, _, b2, g2, be2 = raw[8 * i: 8 * i + 8]
        base = ROWS_PER_LAYER * i
        for j, p in enumerate((b1, g1, be1, b2, g2, be2)):
            rows = rows.at[base + j, : p.shape[1]].set(p[0])
    bc = raw[-1]
    rows = rows.at[BC_ROW, : bc.shape[1]].set(bc[0])
    inv_pad = jnp.zeros((g_pad, 1), jnp.float32).at[: inv_counts.shape[0]].set(inv_counts)
    rows = rows.at[INV_ROW:, :].set(jnp.broadcast_to(inv_pad, (g_pad, c_pad)))
    return w_slab, rows


def build_adjacency(edge_index, num_nodes, gin_eps=GIN_EPS):
    """A'[dst, src] = edge multiplicity, with the GIN self term (1+eps) folded onto the diagonal."""
    src, dst = edge_index[0], edge_index[1]
    adj = jnp.zeros((num_nodes, num_nodes), jnp.float32).at[dst, src].add(1.0)
    return adj + (1.0 + gin_eps) * jnp.eye(num_nodes, dtype=jnp.float32)


def build_mean_pool(batch, num_graphs):
    """Exact 0/1 membership matrix [G, N] and f32 inverse counts [G, 1]."""
    one_hot = jax.nn.one_hot(batch, num_graphs, dtype=jnp.float32).T
    counts = jnp.maximum(one_hot.sum(axis=1, keepdims=True), 1.0)
    return one_hot, 1.0 / counts


# ----------------------------- pure-JAX reference -----------------------------


def _reference_forward(x, adj, pool_oh, inv_counts, params, matmul_dtype=jnp.float32):
    def mm(a, b):
        return jnp.dot(a.astype(matmul_dtype), b.astype(matmul_dtype),
                       preferred_element_type=jnp.float32)

    def bn_relu(z, g, b):
        mean = jnp.mean(z, axis=0, keepdims=True)
        var = jnp.maximum(jnp.mean(z * z, axis=0, keepdims=True) - mean * mean, 0.0)
        return jnp.maximum((z - mean) * jax.lax.rsqrt(var + BN_EPS) * g + b, 0.0)

    h = x
    for i in range(3):
        w1, b1, g1, be1, w2, b2, g2, be2 = params[8 * i: 8 * i + 8]
        h = mm(adj, h)                       # (1+eps) I already folded into adj
        h = bn_relu(mm(h, w1) + b1, g1, be1)
        h = bn_relu(mm(h, w2) + b2, g2, be2)
    wc, bc = params[-2], params[-1]
    pooled = mm(pool_oh, h) * inv_counts
    return mm(pooled, wc) + bc


# ----------------------------------- main -----------------------------------


if __name__ == "__main__":
    # Small deterministic problem: 2 graphs, 16 nodes total, 48 directed edges.
    N_NODES, N_EDGES, N_GRAPHS = 16, 48, 2
    IN_C, HID_C, OUT_C, N_CLASSES = 8, 32, 16, 4

    root = jax.random.PRNGKey(0)
    k_x, k_e, k_p = jax.random.split(root, 3)

    x = jax.random.normal(k_x, (N_NODES, IN_C), jnp.float32)
    edge_index = jax.random.randint(k_e, (2, N_EDGES), 0, N_NODES, jnp.int32)
    batch = jnp.concatenate(
        [jnp.zeros((N_NODES // 2,), jnp.int32),
         jnp.ones((N_NODES - N_NODES // 2,), jnp.int32)]
    )

    raw_params = make_params(k_p, IN_C, HID_C, OUT_C, N_CLASSES)

    # Unpadded pieces (reference).
    adj = build_adjacency(edge_index, N_NODES)                # [N, N], identity folded in
    pool_oh, inv_counts = build_mean_pool(batch, N_GRAPHS)    # [G, N] 0/1, [G, 1]

    # Padded / packed / bf16 pieces (kernel).
    n_pad = _round_up(N_NODES, N_PAD_MULTIPLE)                # full MXU contraction depth
    g_pad = _round_up(N_GRAPHS, 8)
    x_p = _pad2(x, n_pad, C_PAD).astype(jnp.bfloat16)
    adj_p = _pad2(adj, n_pad, n_pad).astype(jnp.bfloat16)     # small ints: bf16-exact
    pool_p = _pad2(pool_oh, g_pad, n_pad).astype(jnp.bfloat16)
    w_slab, row_slab = pack_params(raw_params, inv_counts, c_pad=C_PAD, g_pad=g_pad)

    out = gin_classification_forward(
        x_p, adj_p, pool_p, w_slab, row_slab,
        n_real=N_NODES, num_graphs=N_GRAPHS, num_classes=N_CLASSES)
    out = jax.block_until_ready(out)

    # Matched-precision reference (bf16 matmul operands, f32 accumulation, unpadded arrays):
    # verifies kernel logic + packing + padding exactly.
    ref_bf16 = _reference_forward(x, adj, pool_oh, inv_counts, raw_params,
                                  matmul_dtype=jnp.bfloat16)
    # Full-f32 reference: sanity check that bf16 MXU operands stay numerically close.
    ref_f32 = _reference_forward(x, adj, pool_oh, inv_counts, raw_params,
                                 matmul_dtype=jnp.float32)

    assert out.shape == (N_GRAPHS, N_CLASSES)
    assert jnp.all(jnp.isfinite(out))
    assert jnp.allclose(out, ref_bf16, rtol=1e-2, atol=1e-2), (out, ref_bf16)
    assert jnp.allclose(out, ref_f32, rtol=1e-1, atol=1e-1), (out, ref_f32)

    print("KERNEL_OK")
</pallas_src>

<mosaic_0001>
module attributes {stable_mosaic.version = 11 : i64} {
  func.func @_gin_kernel(%arg0: memref<128x128xbf16, #tpu.memory_space<vmem>>, %arg1: memref<128x128xbf16, #tpu.memory_space<vmem>>, %arg2: memref<8x128xbf16, #tpu.memory_space<vmem>>, %arg3: memref<7x128x128xbf16, #tpu.memory_space<vmem>>, %arg4: memref<40x128xf32, #tpu.memory_space<vmem>>, %arg5: memref<8x128xf32, #tpu.memory_space<vmem>>) attributes {dimension_semantics = [], scalar_prefetch = 0 : i64, scratch_operands = 0 : i64, tpu.core_type = #tpu.core_type<tc>} {
    %0 = tpu.iota {dimensions = array<i32: 0>} : vector<128x128xi32>
    %c16_i32 = arith.constant 16 : i32
    %1 = vector.broadcast %c16_i32 : i32 to vector<128x128xi32>
    %2 = arith.cmpi slt, %0, %1 : vector<128x128xi32>
    %3 = arith.extui %2 : vector<128x128xi1> to vector<128x128xi32>
    %4 = arith.sitofp %3 : vector<128x128xi32> to vector<128x128xf32>
    %c0 = arith.constant 0 : index
    %c0_0 = arith.constant 0 : index
    %5 = vector.load %arg1[%c0, %c0_0] : memref<128x128xbf16, #tpu.memory_space<vmem>>, vector<128x128xbf16>
    %c0_1 = arith.constant 0 : index
    %c0_2 = arith.constant 0 : index
    %6 = vector.load %arg0[%c0_1, %c0_2] : memref<128x128xbf16, #tpu.memory_space<vmem>>, vector<128x128xbf16>
    %c0_3 = arith.constant 0 : index
    %c0_4 = arith.constant 0 : index
    %c0_5 = arith.constant 0 : index
    %7 = vector.load %arg3[%c0_3, %c0_4, %c0_5] : memref<7x128x128xbf16, #tpu.memory_space<vmem>>, vector<1x128x128xbf16>
    %8 = vector.shape_cast %7 : vector<1x128x128xbf16> to vector<128x128xbf16>
    %c1 = arith.constant 1 : index
    %c0_6 = arith.constant 0 : index
    %c0_7 = arith.constant 0 : index
    %9 = vector.load %arg3[%c1, %c0_6, %c0_7] : memref<7x128x128xbf16, #tpu.memory_space<vmem>>, vector<1x128x128xbf16>
    %10 = vector.shape_cast %9 : vector<1x128x128xbf16> to vector<128x128xbf16>
    %cst = arith.constant dense<0.000000e+00> : vector<128x128xf32>
    %11 = tpu.matmul %5, %6, %cst {dimension_numbers = #tpu.dot_dimension_numbers<[1], [0], [0], [1], [0, 0, 1, 1], [], []>} : vector<128x128xbf16>, vector<128x128xbf16>, vector<128x128xf32> -> vector<128x128xf32>
    %12 = arith.truncf %11 : vector<128x128xf32> to vector<128x128xbf16>
    %cst_8 = arith.constant dense<0.000000e+00> : vector<128x128xf32>
    %13 = tpu.matmul %12, %8, %cst_8 {dimension_numbers = #tpu.dot_dimension_numbers<[1], [0], [0], [1], [0, 0, 1, 1], [], []>} : vector<128x128xbf16>, vector<128x128xbf16>, vector<128x128xf32> -> vector<128x128xf32>
    %c0_9 = arith.constant 0 : index
    %c0_10 = arith.constant 0 : index
    %14 = vector.load %arg4[%c0_9, %c0_10] : memref<40x128xf32, #tpu.memory_space<vmem>>, vector<1x128xf32>
    %15 = vector.broadcast %14 : vector<1x128xf32> to vector<128x128xf32>
    %16 = arith.addf %13, %15 : vector<128x128xf32>
    %17 = arith.mulf %16, %4 : vector<128x128xf32>
    %cst_11 = arith.constant dense<0.000000e+00> : vector<128xf32>
    %18 = vector.multi_reduction <add>, %17, %cst_11 [0] : vector<128x128xf32> to vector<128xf32>
    %19 = vector.shape_cast %18 : vector<128xf32> to vector<1x128xf32>
    %20 = arith.mulf %17, %16 : vector<128x128xf32>
    %cst_12 = arith.constant dense<0.000000e+00> : vector<128xf32>
    %21 = vector.multi_reduction <add>, %20, %cst_12 [0] : vector<128x128xf32> to vector<128xf32>
    %22 = vector.shape_cast %21 : vector<128xf32> to vector<1x128xf32>
    %cst_13 = arith.constant 6.250000e-02 : f32
    %23 = vector.broadcast %cst_13 : f32 to vector<1x128xf32>
    %24 = arith.mulf %19, %23 : vector<1x128xf32>
    %cst_14 = arith.constant 6.250000e-02 : f32
    %25 = vector.broadcast %cst_14 : f32 to vector<1x128xf32>
    %26 = arith.mulf %22, %25 : vector<1x128xf32>
    %27 = arith.mulf %24, %24 : vector<1x128xf32>
    %28 = arith.subf %26, %27 : vector<1x128xf32>
    %cst_15 = arith.constant 0.000000e+00 : f32
    %29 = vector.broadcast %cst_15 : f32 to vector<1x128xf32>
    %30 = arith.maximumf %28, %29 : vector<1x128xf32>
    %c1_16 = arith.constant 1 : index
    %c0_17 = arith.constant 0 : index
    %31 = vector.load %arg4[%c1_16, %c0_17] : memref<40x128xf32, #tpu.memory_space<vmem>>, vector<1x128xf32>
    %cst_18 = arith.constant 9.99999974E-6 : f32
    %32 = vector.broadcast %cst_18 : f32 to vector<1x128xf32>
    %33 = arith.addf %30, %32 : vector<1x128xf32>
    %34 = math.rsqrt %33 : vector<1x128xf32>
    %35 = arith.mulf %31, %34 : vector<1x128xf32>
    %c2 = arith.constant 2 : index
    %c0_19 = arith.constant 0 : index
    %36 = vector.load %arg4[%c2, %c0_19] : memref<40x128xf32, #tpu.memory_space<vmem>>, vector<1x128xf32>
    %37 = arith.mulf %24, %35 : vector<1x128xf32>
    %38 = arith.subf %36, %37 : vector<1x128xf32>
    %39 = vector.broadcast %35 : vector<1x128xf32> to vector<128x128xf32>
    %40 = arith.mulf %16, %39 : vector<128x128xf32>
    %41 = vector.broadcast %38 : vector<1x128xf32> to vector<128x128xf32>
    %42 = arith.addf %40, %41 : vector<128x128xf32>
    %cst_20 = arith.constant 0.000000e+00 : f32
    %43 = vector.broadcast %cst_20 : f32 to vector<128x128xf32>
    %44 = arith.maximumf %42, %43 : vector<128x128xf32>
    %45 = arith.truncf %44 : vector<128x128xf32> to vector<128x128xbf16>
    %cst_21 = arith.constant dense<0.000000e+00> : vector<128x128xf32>
    %46 = tpu.matmul %45, %10, %cst_21 {dimension_numbers = #tpu.dot_dimension_numbers<[1], [0], [0], [1], [0, 0, 1, 1], [], []>} : vector<128x128xbf16>, vector<128x128xbf16>, vector<128x128xf32> -> vector<128x128xf32>
    %c3 = arith.constant 3 : index
    %c0_22 = arith.constant 0 : index
    %47 = vector.load %arg4[%c3, %c0_22] : memref<40x128xf32, #tpu.memory_space<vmem>>, vector<1x128xf32>
    %48 = vector.broadcast %47 : vector<1x128xf32> to vector<128x128xf32>
    %49 = arith.addf %46, %48 : vector<128x128xf32>
    %50 = arith.mulf %49, %4 : vector<128x128xf32>
    %cst_23 = arith.constant dense<0.000000e+00> : vector<128xf32>
    %51 = vector.multi_reduction <add>, %50, %cst_23 [0] : vector<128x128xf32> to vector<128xf32>
    %52 = vector.shape_cast %51 : vector<128xf32> to vector<1x128xf32>
    %53 = arith.mulf %50, %49 : vector<128x128xf32>
    %cst_24 = arith.constant dense<0.000000e+00> : vector<128xf32>
    %54 = vector.multi_reduction <add>, %53, %cst_24 [0] : vector<128x128xf32> to vector<128xf32>
    %55 = vector.shape_cast %54 : vector<128xf32> to vector<1x128xf32>
    %cst_25 = arith.constant 6.250000e-02 : f32
    %56 = vector.broadcast %cst_25 : f32 to vector<1x128xf32>
    %57 = arith.mulf %52, %56 : vector<1x128xf32>
    %cst_26 = arith.constant 6.250000e-02 : f32
    %58 = vector.broadcast %cst_26 : f32 to vector<1x128xf32>
    %59 = arith.mulf %55, %58 : vector<1x128xf32>
    %60 = arith.mulf %57, %57 : vector<1x128xf32>
    %61 = arith.subf %59, %60 : vector<1x128xf32>
    %cst_27 = arith.constant 0.000000e+00 : f32
    %62 = vector.broadcast %cst_27 : f32 to vector<1x128xf32>
    %63 = arith.maximumf %61, %62 : vector<1x128xf32>
    %c4 = arith.constant 4 : index
    %c0_28 = arith.constant 0 : index
    %64 = vector.load %arg4[%c4, %c0_28] : memref<40x128xf32, #tpu.memory_space<vmem>>, vector<1x128xf32>
    %cst_29 = arith.constant 9.99999974E-6 : f32
    %65 = vector.broadcast %cst_29 : f32 to vector<1x128xf32>
    %66 = arith.addf %63, %65 : vector<1x128xf32>
    %67 = math.rsqrt %66 : vector<1x128xf32>
    %68 = arith.mulf %64, %67 : vector<1x128xf32>
    %c5 = arith.constant 5 : index
    %c0_30 = arith.constant 0 : index
    %69 = vector.load %arg4[%c5, %c0_30] : memref<40x128xf32, #tpu.memory_space<vmem>>, vector<1x128xf32>
    %70 = arith.mulf %57, %68 : vector<1x128xf32>
    %71 = arith.subf %69, %70 : vector<1x128xf32>
    %72 = vector.broadcast %68 : vector<1x128xf32> to vector<128x128xf32>
    %73 = arith.mulf %49, %72 : vector<128x128xf32>
    %74 = vector.broadcast %71 : vector<1x128xf32> to vector<128x128xf32>
    %75 = arith.addf %73, %74 : vector<128x128xf32>
    %cst_31 = arith.constant 0.000000e+00 : f32
    %76 = vector.broadcast %cst_31 : f32 to vector<128x128xf32>
    %77 = arith.maximumf %75, %76 : vector<128x128xf32>
    %78 = arith.truncf %77 : vector<128x128xf32> to vector<128x128xbf16>
    %c2_32 = arith.constant 2 : index
    %c0_33 = arith.constant 0 : index
    %c0_34 = arith.constant 0 : index
    %79 = vector.load %arg3[%c2_32, %c0_33, %c0_34] : memref<7x128x128xbf16, #tpu.memory_space<vmem>>, vector<1x128x128xbf16>
    %80 = vector.shape_cast %79 : vector<1x128x128xbf16> to vector<128x128xbf16>
    %c3_35 = arith.constant 3 : index
    %c0_36 = arith.constant 0 : index
    %c0_37 = arith.constant 0 : index
    %81 = vector.load %arg3[%c3_35, %c0_36, %c0_37] : memref<7x128x128xbf16, #tpu.memory_space<vmem>>, vector<1x128x128xbf16>
    %82 = vector.shape_cast %81 : vector<1x128x128xbf16> to vector<128x128xbf16>
    %cst_38 = arith.constant dense<0.000000e+00> : vector<128x128xf32>
    %83 = tpu.matmul %5, %78, %cst_38 {dimension_numbers = #tpu.dot_dimension_numbers<[1], [0], [0], [1], [0, 0, 1, 1], [], []>} : vector<128x128xbf16>, vector<128x128xbf16>, vector<128x128xf32> -> vector<128x128xf32>
    %84 = arith.truncf %83 : vector<128x128xf32> to vector<128x128xbf16>
    %cst_39 = arith.constant dense<0.000000e+00> : vector<128x128xf32>
    %85 = tpu.matmul %84, %80, %cst_39 {dimension_numbers = #tpu.dot_dimension_numbers<[1], [0], [0], [1], [0, 0, 1, 1], [], []>} : vector<128x128xbf16>, vector<128x128xbf16>, vector<128x128xf32> -> vector<128x128xf32>
    %c8 = arith.constant 8 : index
    %c0_40 = arith.constant 0 : index
    %86 = vector.load %arg4[%c8, %c0_40] : memref<40x128xf32, #tpu.memory_space<vmem>>, vector<1x128xf32>
    %87 = vector.broadcast %86 : vector<1x128xf32> to vector<128x128xf32>
    %88 = arith.addf %85, %87 : vector<128x128xf32>
    %89 = arith.mulf %88, %4 : vector<128x128xf32>
    %cst_41 = arith.constant dense<0.000000e+00> : vector<128xf32>
    %90 = vector.multi_reduction <add>, %89, %cst_41 [0] : vector<128x128xf32> to vector<128xf32>
    %91 = vector.shape_cast %90 : vector<128xf32> to vector<1x128xf32>
    %92 = arith.mulf %89, %88 : vector<128x128xf32>
    %cst_42 = arith.constant dense<0.000000e+00> : vector<128xf32>
    %93 = vector.multi_reduction <add>, %92, %cst_42 [0] : vector<128x128xf32> to vector<128xf32>
    %94 = vector.shape_cast %93 : vector<128xf32> to vector<1x128xf32>
    %cst_43 = arith.constant 6.250000e-02 : f32
    %95 = vector.broadcast %cst_43 : f32 to vector<1x128xf32>
    %96 = arith.mulf %91, %95 : vector<1x128xf32>
    %cst_44 = arith.constant 6.250000e-02 : f32
    %97 = vector.broadcast %cst_44 : f32 to vector<1x128xf32>
    %98 = arith.mulf %94, %97 : vector<1x128xf32>
    %99 = arith.mulf %96, %96 : vector<1x128xf32>
    %100 = arith.subf %98, %99 : vector<1x128xf32>
    %cst_45 = arith.constant 0.000000e+00 : f32
    %101 = vector.broadcast %cst_45 : f32 to vector<1x128xf32>
    %102 = arith.maximumf %100, %101 : vector<1x128xf32>
    %c9 = arith.constant 9 : index
    %c0_46 = arith.constant 0 : index
    %103 = vector.load %arg4[%c9, %c0_46] : memref<40x128xf32, #tpu.memory_space<vmem>>, vector<1x128xf32>
    %cst_47 = arith.constant 9.99999974E-6 : f32
    %104 = vector.broadcast %cst_47 : f32 to vector<1x128xf32>
    %105 = arith.addf %102, %104 : vector<1x128xf32>
    %106 = math.rsqrt %105 : vector<1x128xf32>
    %107 = arith.mulf %103, %106 : vector<1x128xf32>
    %c10 = arith.constant 10 : index
    %c0_48 = arith.constant 0 : index
    %108 = vector.load %arg4[%c10, %c0_48] : memref<40x128xf32, #tpu.memory_space<vmem>>, vector<1x128xf32>
    %109 = arith.mulf %96, %107 : vector<1x128xf32>
    %110 = arith.subf %108, %109 : vector<1x128xf32>
    %111 = vector.broadcast %107 : vector<1x128xf32> to vector<128x128xf32>
    %112 = arith.mulf %88, %111 : vector<128x128xf32>
    %113 = vector.broadcast %110 : vector<1x128xf32> to vector<128x128xf32>
    %114 = arith.addf %112, %113 : vector<128x128xf32>
    %cst_49 = arith.constant 0.000000e+00 : f32
    %115 = vector.broadcast %cst_49 : f32 to vector<128x128xf32>
    %116 = arith.maximumf %114, %115 : vector<128x128xf32>
    %117 = arith.truncf %116 : vector<128x128xf32> to vector<128x128xbf16>
    %cst_50 = arith.constant dense<0.000000e+00> : vector<128x128xf32>
    %118 = tpu.matmul %117, %82, %cst_50 {dimension_numbers = #tpu.dot_dimension_numbers<[1], [0], [0], [1], [0, 0, 1, 1], [], []>} : vector<128x128xbf16>, vector<128x128xbf16>, vector<128x128xf32> -> vector<128x128xf32>
    %c11 = arith.constant 11 : index
    %c0_51 = arith.constant 0 : index
    %119 = vector.load %arg4[%c11, %c0_51] : memref<40x128xf32, #tpu.memory_space<vmem>>, vector<1x128xf32>
    %120 = vector.broadcast %119 : vector<1x128xf32> to vector<128x128xf32>
    %121 = arith.addf %118, %120 : vector<128x128xf32>
    %122 = arith.mulf %121, %4 : vector<128x128xf32>
    %cst_52 = arith.constant dense<0.000000e+00> : vector<128xf32>
    %123 = vector.multi_reduction <add>, %122, %cst_52 [0] : vector<128x128xf32> to vector<128xf32>
    %124 = vector.shape_cast %123 : vector<128xf32> to vector<1x128xf32>
    %125 = arith.mulf %122, %121 : vector<128x128xf32>
    %cst_53 = arith.constant dense<0.000000e+00> : vector<128xf32>
    %126 = vector.multi_reduction <add>, %125, %cst_53 [0] : vector<128x128xf32> to vector<128xf32>
    %127 = vector.shape_cast %126 : vector<128xf32> to vector<1x128xf32>
    %cst_54 = arith.constant 6.250000e-02 : f32
    %128 = vector.broadcast %cst_54 : f32 to vector<1x128xf32>
    %129 = arith.mulf %124, %128 : vector<1x128xf32>
    %cst_55 = arith.constant 6.250000e-02 : f32
    %130 = vector.broadcast %cst_55 : f32 to vector<1x128xf32>
    %131 = arith.mulf %127, %130 : vector<1x128xf32>
    %132 = arith.mulf %129, %129 : vector<1x128xf32>
    %133 = arith.subf %131, %132 : vector<1x128xf32>
    %cst_56 = arith.constant 0.000000e+00 : f32
    %134 = vector.broadcast %cst_56 : f32 to vector<1x128xf32>
    %135 = arith.maximumf %133, %134 : vector<1x128xf32>
    %c12 = arith.constant 12 : index
    %c0_57 = arith.constant 0 : index
    %136 = vector.load %arg4[%c12, %c0_57] : memref<40x128xf32, #tpu.memory_space<vmem>>, vector<1x128xf32>
    %cst_58 = arith.constant 9.99999974E-6 : f32
    %137 = vector.broadcast %cst_58 : f32 to vector<1x128xf32>
    %138 = arith.addf %135, %137 : vector<1x128xf32>
    %139 = math.rsqrt %138 : vector<1x128xf32>
    %140 = arith.mulf %136, %139 : vector<1x128xf32>
    %c13 = arith.constant 13 : index
    %c0_59 = arith.constant 0 : index
    %141 = vector.load %arg4[%c13, %c0_59] : memref<40x128xf32, #tpu.memory_space<vmem>>, vector<1x128xf32>
    %142 = arith.mulf %129, %140 : vector<1x128xf32>
    %143 = arith.subf %141, %142 : vector<1x128xf32>
    %144 = vector.broadcast %140 : vector<1x128xf32> to vector<128x128xf32>
    %145 = arith.mulf %121, %144 : vector<128x128xf32>
    %146 = vector.broadcast %143 : vector<1x128xf32> to vector<128x128xf32>
    %147 = arith.addf %145, %146 : vector<128x128xf32>
    %cst_60 = arith.constant 0.000000e+00 : f32
    %148 = vector.broadcast %cst_60 : f32 to vector<128x128xf32>
    %149 = arith.maximumf %147, %148 : vector<128x128xf32>
    %150 = arith.truncf %149 : vector<128x128xf32> to vector<128x128xbf16>
    %c4_61 = arith.constant 4 : index
    %c0_62 = arith.constant 0 : index
    %c0_63 = arith.constant 0 : index
    %151 = vector.load %arg3[%c4_61, %c0_62, %c0_63] : memref<7x128x128xbf16, #tpu.memory_space<vmem>>, vector<1x128x128xbf16>
    %152 = vector.shape_cast %151 : vector<1x128x128xbf16> to vector<128x128xbf16>
    %c5_64 = arith.constant 5 : index
    %c0_65 = arith.constant 0 : index
    %c0_66 = arith.constant 0 : index
    %153 = vector.load %arg3[%c5_64, %c0_65, %c0_66] : memref<7x128x128xbf16, #tpu.memory_space<vmem>>, vector<1x128x128xbf16>
    %154 = vector.shape_cast %153 : vector<1x128x128xbf16> to vector<128x128xbf16>
    %cst_67 = arith.constant dense<0.000000e+00> : vector<128x128xf32>
    %155 = tpu.matmul %5, %150, %cst_67 {dimension_numbers = #tpu.dot_dimension_numbers<[1], [0], [0], [1], [0, 0, 1, 1], [], []>} : vector<128x128xbf16>, vector<128x128xbf16>, vector<128x128xf32> -> vector<128x128xf32>
    %156 = arith.truncf %155 : vector<128x128xf32> to vector<128x128xbf16>
    %cst_68 = arith.constant dense<0.000000e+00> : vector<128x128xf32>
    %157 = tpu.matmul %156, %152, %cst_68 {dimension_numbers = #tpu.dot_dimension_numbers<[1], [0], [0], [1], [0, 0, 1, 1], [], []>} : vector<128x128xbf16>, vector<128x128xbf16>, vector<128x128xf32> -> vector<128x128xf32>
    %c16 = arith.constant 16 : index
    %c0_69 = arith.constant 0 : index
    %158 = vector.load %arg4[%c16, %c0_69] : memref<40x128xf32, #tpu.memory_space<vmem>>, vector<1x128xf32>
    %159 = vector.broadcast %158 : vector<1x128xf32> to vector<128x128xf32>
    %160 = arith.addf %157, %159 : vector<128x128xf32>
    %161 = arith.mulf %160, %4 : vector<128x128xf32>
    %cst_70 = arith.constant dense<0.000000e+00> : vector<128xf32>
    %162 = vector.multi_reduction <add>, %161, %cst_70 [0] : vector<128x128xf32> to vector<128xf32>
    %163 = vector.shape_cast %162 : vector<128xf32> to vector<1x128xf32>
    %164 = arith.mulf %161, %160 : vector<128x128xf32>
    %cst_71 = arith.constant dense<0.000000e+00> : vector<128xf32>
    %165 = vector.multi_reduction <add>, %164, %cst_71 [0] : vector<128x128xf32> to vector<128xf32>
    %166 = vector.shape_cast %165 : vector<128xf32> to vector<1x128xf32>
    %cst_72 = arith.constant 6.250000e-02 : f32
    %167 = vector.broadcast %cst_72 : f32 to vector<1x128xf32>
    %168 = arith.mulf %163, %167 : vector<1x128xf32>
    %cst_73 = arith.constant 6.250000e-02 : f32
    %169 = vector.broadcast %cst_73 : f32 to vector<1x128xf32>
    %170 = arith.mulf %166, %169 : vector<1x128xf32>
    %171 = arith.mulf %168, %168 : vector<1x128xf32>
    %172 = arith.subf %170, %171 : vector<1x128xf32>
    %cst_74 = arith.constant 0.000000e+00 : f32
    %173 = vector.broadcast %cst_74 : f32 to vector<1x128xf32>
    %174 = arith.maximumf %172, %173 : vector<1x128xf32>
    %c17 = arith.constant 17 : index
    %c0_75 = arith.constant 0 : index
    %175 = vector.load %arg4[%c17, %c0_75] : memref<40x128xf32, #tpu.memory_space<vmem>>, vector<1x128xf32>
    %cst_76 = arith.constant 9.99999974E-6 : f32
    %176 = vector.broadcast %cst_76 : f32 to vector<1x128xf32>
    %177 = arith.addf %174, %176 : vector<1x128xf32>
    %178 = math.rsqrt %177 : vector<1x128xf32>
    %179 = arith.mulf %175, %178 : vector<1x128xf32>
    %c18 = arith.constant 18 : index
    %c0_77 = arith.constant 0 : index
    %180 = vector.load %arg4[%c18, %c0_77] : memref<40x128xf32, #tpu.memory_space<vmem>>, vector<1x128xf32>
    %181 = arith.mulf %168, %179 : vector<1x128xf32>
    %182 = arith.subf %180, %181 : vector<1x128xf32>
    %183 = vector.broadcast %179 : vector<1x128xf32> to vector<128x128xf32>
    %184 = arith.mulf %160, %183 : vector<128x128xf32>
    %185 = vector.broadcast %182 : vector<1x128xf32> to vector<128x128xf32>
    %186 = arith.addf %184, %185 : vector<128x128xf32>
    %cst_78 = arith.constant 0.000000e+00 : f32
    %187 = vector.broadcast %cst_78 : f32 to vector<128x128xf32>
    %188 = arith.maximumf %186, %187 : vector<128x128xf32>
    %189 = arith.truncf %188 : vector<128x128xf32> to vector<128x128xbf16>
    %cst_79 = arith.constant dense<0.000000e+00> : vector<128x128xf32>
    %190 = tpu.matmul %189, %154, %cst_79 {dimension_numbers = #tpu.dot_dimension_numbers<[1], [0], [0], [1], [0, 0, 1, 1], [], []>} : vector<128x128xbf16>, vector<128x128xbf16>, vector<128x128xf32> -> vector<128x128xf32>
    %c19 = arith.constant 19 : index
    %c0_80 = arith.constant 0 : index
    %191 = vector.load %arg4[%c19, %c0_80] : memref<40x128xf32, #tpu.memory_space<vmem>>, vector<1x128xf32>
    %192 = vector.broadcast %191 : vector<1x128xf32> to vector<128x128xf32>
    %193 = arith.addf %190, %192 : vector<128x128xf32>
    %194 = arith.mulf %193, %4 : vector<128x128xf32>
    %cst_81 = arith.constant dense<0.000000e+00> : vector<128xf32>
    %195 = vector.multi_reduction <add>, %194, %cst_81 [0] : vector<128x128xf32> to vector<128xf32>
    %196 = vector.shape_cast %195 : vector<128xf32> to vector<1x128xf32>
    %197 = arith.mulf %194, %193 : vector<128x128xf32>
    %cst_82 = arith.constant dense<0.000000e+00> : vector<128xf32>
    %198 = vector.multi_reduction <add>, %197, %cst_82 [0] : vector<128x128xf32> to vector<128xf32>
    %199 = vector.shape_cast %198 : vector<128xf32> to vector<1x128xf32>
    %cst_83 = arith.constant 6.250000e-02 : f32
    %200 = vector.broadcast %cst_83 : f32 to vector<1x128xf32>
    %201 = arith.mulf %196, %200 : vector<1x128xf32>
    %cst_84 = arith.constant 6.250000e-02 : f32
    %202 = vector.broadcast %cst_84 : f32 to vector<1x128xf32>
    %203 = arith.mulf %199, %202 : vector<1x128xf32>
    %204 = arith.mulf %201, %201 : vector<1x128xf32>
    %205 = arith.subf %203, %204 : vector<1x128xf32>
    %cst_85 = arith.constant 0.000000e+00 : f32
    %206 = vector.broadcast %cst_85 : f32 to vector<1x128xf32>
    %207 = arith.maximumf %205, %206 : vector<1x128xf32>
    %c20 = arith.constant 20 : index
    %c0_86 = arith.constant 0 : index
    %208 = vector.load %arg4[%c20, %c0_86] : memref<40x128xf32, #tpu.memory_space<vmem>>, vector<1x128xf32>
    %cst_87 = arith.constant 9.99999974E-6 : f32
    %209 = vector.broadcast %cst_87 : f32 to vector<1x128xf32>
    %210 = arith.addf %207, %209 : vector<1x128xf32>
    %211 = math.rsqrt %210 : vector<1x128xf32>
    %212 = arith.mulf %208, %211 : vector<1x128xf32>
    %c21 = arith.constant 21 : index
    %c0_88 = arith.constant 0 : index
    %213 = vector.load %arg4[%c21, %c0_88] : memref<40x128xf32, #tpu.memory_space<vmem>>, vector<1x128xf32>
    %214 = arith.mulf %201, %212 : vector<1x128xf32>
    %215 = arith.subf %213, %214 : vector<1x128xf32>
    %216 = vector.broadcast %212 : vector<1x128xf32> to vector<128x128xf32>
    %217 = arith.mulf %193, %216 : vector<128x128xf32>
    %218 = vector.broadcast %215 : vector<1x128xf32> to vector<128x128xf32>
    %219 = arith.addf %217, %218 : vector<128x128xf32>
    %cst_89 = arith.constant 0.000000e+00 : f32
    %220 = vector.broadcast %cst_89 : f32 to vector<128x128xf32>
    %221 = arith.maximumf %219, %220 : vector<128x128xf32>
    %222 = arith.truncf %221 : vector<128x128xf32> to vector<128x128xbf16>
    %c0_90 = arith.constant 0 : index
    %c0_91 = arith.constant 0 : index
    %223 = vector.load %arg2[%c0_90, %c0_91] : memref<8x128xbf16, #tpu.memory_space<vmem>>, vector<8x128xbf16>
    %cst_92 = arith.constant dense<0.000000e+00> : vector<8x128xf32>
    %224 = tpu.matmul %223, %222, %cst_92 {dimension_numbers = #tpu.dot_dimension_numbers<[1], [0], [0], [1], [0, 0, 1, 1], [], []>} : vector<8x128xbf16>, vector<128x128xbf16>, vector<8x128xf32> -> vector<8x128xf32>
    %c32 = arith.constant 32 : index
    %c0_93 = arith.constant 0 : index
    %225 = vector.load %arg4[%c32, %c0_93] : memref<40x128xf32, #tpu.memory_space<vmem>>, vector<8x128xf32>
    %226 = arith.mulf %224, %225 : vector<8x128xf32>
    %227 = arith.truncf %226 : vector<8x128xf32> to vector<8x128xbf16>
    %c6 = arith.constant 6 : index
    %c0_94 = arith.constant 0 : index
    %c0_95 = arith.constant 0 : index
    %228 = vector.load %arg3[%c6, %c0_94, %c0_95] : memref<7x128x128xbf16, #tpu.memory_space<vmem>>, vector<1x128x128xbf16>
    %229 = vector.shape_cast %228 : vector<1x128x128xbf16> to vector<128x128xbf16>
    %cst_96 = arith.constant dense<0.000000e+00> : vector<8x128xf32>
    %230 = tpu.matmul %227, %229, %cst_96 {dimension_numbers = #tpu.dot_dimension_numbers<[1], [0], [0], [1], [0, 0, 1, 1], [], []>} : vector<8x128xbf16>, vector<128x128xbf16>, vector<8x128xf32> -> vector<8x128xf32>
    %c24 = arith.constant 24 : index
    %c0_97 = arith.constant 0 : index
    %231 = vector.load %arg4[%c24, %c0_97] : memref<40x128xf32, #tpu.memory_space<vmem>>, vector<1x128xf32>
    %232 = vector.broadcast %231 : vector<1x128xf32> to vector<8x128xf32>
    %233 = arith.addf %230, %232 : vector<8x128xf32>
    %c0_98 = arith.constant 0 : index
    %c0_99 = arith.constant 0 : index
    %234 = vector.load %arg5[%c0_98, %c0_99] : memref<8x128xf32, #tpu.memory_space<vmem>>, vector<8x128xf32>
    tpu.vector_store %arg5[%c0_98, %c0_99], %233 {strides = array<i32>} : memref<8x128xf32, #tpu.memory_space<vmem>>, vector<8x128xf32>,
    return
  }
}

</mosaic_0001>

<bundles_post_ra>
// kernel: tpu_custom_call.1
= control target key start
LH: loop header
LB: loop body
LE: loop exit
PB: predicated region body
PF: predicated region fallthrough
CT: control target
= control target key end

     0   :  { %10 = vsyncpa [#allocation3], 0  ;;  %s4139_s0 = inlined_call_operand.hbm [shape: bf16[128,128], index: 0, kind: input, shape index: {}]   ;;  %s4140_s1 = inlined_call_operand.hbm [shape: bf16[128,128], index: 1, kind: input, shape index: {}]   ;;  %s4141_s2 = inlined_call_operand.hbm [shape: bf16[8,128], index: 2, kind: input, shape index: {}]   ;;  %s4142_s3 = inlined_call_operand.hbm [shape: bf16[7,128,128], index: 3, kind: input, shape index: {}]   ;;  %s4143_s4 = inlined_call_operand.hbm [shape: f32[40,128], index: 4, kind: input, shape index: {}]   ;;  %s4144_s5 = inlined_call_operand.hbm [shape: f32[8,128], index: 5, kind: output, shape index: {}]  }
   0x1   :  { %11 = vsyncpa [#allocation6], 0 }
   0x2   :  { %12 = vsyncpa [#allocation9], 0 }
   0x3   :  { %13 = vsyncpa [#allocation4], 0  ;;  %s3470_s18 = smov [#allocation5]   ;;  %s3471_s20 = smov [#allocation8]  }
   0x4   :  { %s31_s19 = sshll.u32 %s3470_s18, 4  ;;  %s53_s21 = sshll.u32 %s3471_s20, 4  ;;  %s32_s19 = int_to_ptr.vmem [resolvable:$true] %s31_s19  ;;  %s54_s21 = int_to_ptr.vmem [resolvable:$true] %s53_s21 }
   0x5   :  { %s3350_s22 = scalar_lea.vmem %s32_s19, 1024  ;;  %p3355_p1 = scmp.lt.s32.totalorder %s32_s19, %s32_s19 }
   0x6   :  { %p3351_p0 = scmp.ne.s32.totalorder %s32_s19, %s3350_s22  ;;  %p3356_p2 = scmp.lt.s32.totalorder %s3350_s22, %s3350_s22 }
   0x8   :  { %p3357_p3 = por %p3356_p2, %p3355_p1 }
   0xa   :  { %p3358_p4 = pnand %p3357_p3, %p3351_p0 }
   0xc   :  { %3361 = shalt.err (!%p3358_p4)
}
   0xd   :  { %s3472_s23 = smov 64   ;;  %s3473_s24 = smov 4  }
   0xe   :  { %37 = dma.hbm_to_vmem [thread:$0]  %s4140_s1, 1024, %s32_s19, [#allocation6], %s3472_s23, %s3472_s23, %s3473_s24  }
   0xf   :  { %s3370_s27 = scalar_lea.vmem %s54_s21, 7168  ;;  %p3375_p6 = scmp.lt.s32.totalorder %s54_s21, %s54_s21 }
  0x10   :  { %p3371_p5 = scmp.ne.s32.totalorder %s54_s21, %s3370_s27  ;;  %p3376_p7 = scmp.lt.s32.totalorder %s3370_s27, %s3370_s27 }
  0x12   :  { %p3377_p8 = por %p3376_p7, %p3375_p6 }
  0x14   :  { %p3378_p9 = pnand %p3377_p8, %p3371_p5 }
  0x16   :  { %3381 = shalt.err (!%p3378_p9)
}
  0x17   :  { %59 = dma.hbm_to_vmem [thread:$0]  %s4142_s3, 7168, %s54_s21, [#allocation9], %s3472_s23, %s3472_s23, %s3473_s24  }
  0x18   :  { %s3474_s30 = smov [#allocation2]   ;;  %s3475_s7 = smov [#allocation7]  }
  0x19   :  { %s19_s6 = sshll.u32 %s3474_s30, 4  ;;  %s44_s8 = sshll.u32 %s3475_s7, 4  ;;  %s20_s6 = int_to_ptr.vmem [resolvable:$true] %s19_s6  ;;  %s45_s8 = int_to_ptr.vmem [resolvable:$true] %s44_s8 }
  0x1a   :  { %s3390_s9 = scalar_lea.vmem %s20_s6, 1024  ;;  %p3395_p11 = scmp.lt.s32.totalorder %s20_s6, %s20_s6 }
  0x1b   :  { %p3391_p10 = scmp.ne.s32.totalorder %s20_s6, %s3390_s9  ;;  %p3396_p12 = scmp.lt.s32.totalorder %s3390_s9, %s3390_s9 }
  0x1d   :  { %p3397_p13 = por %p3396_p12, %p3395_p11 }
  0x1f   :  { %p3398_p0 = pnand %p3397_p13, %p3391_p10 }
  0x21   :  { %3401 = shalt.err (!%p3398_p0)
}
  0x22   :  { %25 = dma.hbm_to_vmem [thread:$0]  %s4139_s0, 1024, %s20_s6, [#allocation3], %s3472_s23, %s3472_s23, %s3473_s24  }
  0x23   :  { %s3410_s11 = scalar_lea.vmem %s45_s8, 64  ;;  %p3415_p2 = scmp.lt.s32.totalorder %s45_s8, %s45_s8 }
  0x24   :  { %p3411_p1 = scmp.ne.s32.totalorder %s45_s8, %s3410_s11  ;;  %p3416_p3 = scmp.lt.s32.totalorder %s3410_s11, %s3410_s11 }
  0x26   :  { %p3417_p4 = por %p3416_p3, %p3415_p2 }
  0x28   :  { %p3418_p5 = pnand %p3417_p4, %p3411_p1 }
  0x2a   :  { %3421 = shalt.err (!%p3418_p5)
}
  0x2b   :  { %47 = dma.hbm_to_vmem [thread:$0]  %s4141_s2, 64, %s45_s8, [#allocation6]  }
  0x2c   :  { %s3476_s13 = smov [#allocation10]  }
  0x2d   :  { %s65_s14 = sshll.u32 %s3476_s13, 4  ;;  %s66_s14 = int_to_ptr.vmem [resolvable:$true] %s65_s14 }
  0x2e   :  { %s3430_s15 = scalar_lea.vmem %s66_s14, 640  ;;  %p3435_p7 = scmp.lt.s32.totalorder %s66_s14, %s66_s14 }
  0x2f   :  { %p3431_p6 = scmp.ne.s32.totalorder %s66_s14, %s3430_s15  ;;  %p3436_p8 = scmp.lt.s32.totalorder %s3430_s15, %s3430_s15 }
  0x31   :  { %p3437_p9 = por %p3436_p8, %p3435_p7 }
  0x33   :  { %p3438_p10 = pnand %p3437_p9, %p3431_p6 }
  0x35   :  { %3441 = shalt.err (!%p3438_p10)
}
  0x36   :  { %s3477_s0 = smov 128   ;;  %s3478_s16 = smov 8  }
  0x37   :  { %71 = dma.hbm_to_vmem [thread:$0]  %s4143_s4, 640, %s66_s14, [#allocation9], %s3477_s0, %s3477_s0, %s3478_s16  }
  0x38   :  { %3462 = dma.done.wait [#allocation3], 1024  }
  0x39   :  { %3463 = vsyncadd [#allocation3], 4294966272 }
  0x3a   :  { %3464 = dma.done.wait [#allocation6], 1088  }
  0x3b   :  { %3465 = vsyncadd [#allocation6], 4294966208 }
  0x3c   :  { %3466 = dma.done.wait [#allocation9], 7808  }
  0x3d   :  { %3467 = vsyncadd [#allocation9], 4294959488  ;;  %v3250_v0 = vld [vmem:[#allocation2 + $0x38] sm:$0xff]   ;;  %v3251_v1 = vld [vmem:[#allocation2 + $0x30] sm:$0xff]   ;;  %vm3480_vm0 = vmmov 0   ;;  %s3481_s2 = smov [#allocation11]  }
  0x3e   :  { %2910 = vmatprep.subr.bf16.mxu0 %v3250_v0  ;;  %v3252_v2 = vld [vmem:[#allocation2 + $0x28] sm:$0xff]   ;;  %v3253_v3 = vld [vmem:[#allocation2 + $0x20] sm:$0xff]   ;;  %v3254_v5 = vld [vmem:[#allocation2 + $0x18] sm:$0xff]   ;;  %s2658_s4 = sshll.u32 %s3481_s2, 4  ;;  %s2659_s4 = int_to_ptr.vmem [resolvable:$true] %s2658_s4 }
  0x3f   :  { %2911 = vmatpush3.bf16.msra.mxu0 %v3250_v0  ;;  %v3527_v4 = vld [vmem:[#allocation5] sm:$0xff]   ;;  %v3255_v6 = vld [vmem:[#allocation2 + $0x10] sm:$0xff]   ;;  %v3256_v9 = vld [vmem:[#allocation2 + $0x8] sm:$0xff]   ;;  %s3442_s19 = scalar_lea.vmem %s2659_s4, 128  ;;  %p3447_p12 = scmp.lt.s32.totalorder %s2659_s4, %s2659_s4 }
  0x40   :  { %2912 = vmatprep.subr.bf16.mxu0 %v3251_v1  ;;  %2926 = vmatprep.mubr.bf16.mxu0 %v3527_v4  ;;  %v3266_v7 = vld [vmem:[#allocation8 + $0x38] sm:$0xff]   ;;  %v3267_v8 = vld [vmem:[#allocation8 + $0x30] sm:$0xff]   ;;  %v3268_v10 = vld [vmem:[#allocation8 + $0x28] sm:$0xff]   ;;  %p3443_p11 = scmp.ne.s32.totalorder %s2659_s4, %s3442_s19  ;;  %p3448_p13 = scmp.lt.s32.totalorder %s3442_s19, %s3442_s19 }
  0x41   :  { %2942 = vmatprep.subr.bf16.mxu1 %v3266_v7  ;;  %v3257_v11 = vld [vmem:[#allocation2] sm:$0xff]   ;;  %v3259_v14 = vld [vmem:[#allocation5 + $0x8] sm:$0xff]   ;;  %v3260_v15 = vld [vmem:[#allocation5 + $0x10] sm:$0xff]  }
  0x42   :  { %2943 = vmatpush3.bf16.msra.mxu1 %v3266_v7  ;;  %v3269_v12 = vld [vmem:[#allocation8 + $0x20] sm:$0xff]   ;;  %v3270_v13 = vld [vmem:[#allocation8 + $0x18] sm:$0xff]   ;;  %v3271_v16 = vld [vmem:[#allocation8 + $0x10] sm:$0xff]   ;;  %p3449_p0 = por %p3448_p13, %p3447_p12 }
  0x43   :  { %2913 = vmatpush3.bf16.msra.mxu0 %v3251_v1  ;;  %2944 = vmatprep.subr.bf16.mxu1 %v3267_v8  ;;  %v3261_v17 = vld [vmem:[#allocation5 + $0x18] sm:$0xff]   ;;  %v3262_v18 = vld [vmem:[#allocation5 + $0x20] sm:$0xff]   ;;  %v3530_v19 = vld [vmem:[#allocation5 + $0x28] sm:$0xff]  }
  0x44   :  { %2914 = vmatprep.subr.bf16.mxu0 %v3252_v2  ;;  %v3532_v20 = vld [vmem:[#allocation5 + $0x30] sm:$0xff]   ;;  %v3536_v21 = vld [vmem:[#allocation5 + $0x38] sm:$0xff]   ;;  %v3273_v23 = vld [vmem:[#allocation8] sm:$0xff]   ;;  %p3450_p1 = pnand %p3449_p0, %p3443_p11 }
  0x45   :  { %v3272_v22 = vld [vmem:[#allocation8 + $0x8] sm:$0xff]   ;;  %v3274_v48 = vld [vmem:[#allocation8 + $0x78] sm:$0xff]   ;;  %v3275_v49 = vld [vmem:[#allocation8 + $0x70] sm:$0xff]  }
  0x46   :  { %2945 = vmatpush3.bf16.msra.mxu1 %v3267_v8  ;;  %v3276_v50 = vld [vmem:[#allocation8 + $0x68] sm:$0xff]   ;;  %v3277_v51 = vld [vmem:[#allocation8 + $0x60] sm:$0xff]   ;;  %v3278_v52 = vld [vmem:[#allocation8 + $0x58] sm:$0xff]  }
  0x47   :  { %2915 = vmatpush3.bf16.msra.mxu0 %v3252_v2  ;;  %2946 = vmatprep.subr.bf16.mxu1 %v3268_v10  ;;  %v3279_v53 = vld [vmem:[#allocation8 + $0x50] sm:$0xff]   ;;  %v3280_v54 = vld [vmem:[#allocation8 + $0x48] sm:$0xff]   ;;  %v3281_v55 = vld [vmem:[#allocation8 + $0x40] sm:$0xff]  }
  0x48   :  { %2916 = vmatprep.subr.bf16.mxu0 %v3253_v3  ;;  %v3540_v57 = vld [vmem:[#allocation10] ss:$0 sm:$0xff] }
  0x4a   :  { %2947 = vmatpush3.bf16.msra.mxu1 %v3268_v10 }
  0x4b   :  { %2917 = vmatpush3.bf16.msra.mxu0 %v3253_v3  ;;  %2948 = vmatprep.subr.bf16.mxu1 %v3269_v12 }
  0x4c   :  { %2918 = vmatprep.subr.bf16.mxu0 %v3254_v5 }
  0x4e   :  { %2949 = vmatpush3.bf16.msra.mxu1 %v3269_v12 }
  0x4f   :  { %2919 = vmatpush3.bf16.msra.mxu0 %v3254_v5  ;;  %2950 = vmatprep.subr.bf16.mxu1 %v3270_v13 }
  0x50   :  { %2920 = vmatprep.subr.bf16.mxu0 %v3255_v6 }
  0x52   :  { %2951 = vmatpush3.bf16.msra.mxu1 %v3270_v13 }
  0x53   :  { %2921 = vmatpush3.bf16.msra.mxu0 %v3255_v6  ;;  %2952 = vmatprep.subr.bf16.mxu1 %v3271_v16 }
  0x54   :  { %2922 = vmatprep.subr.bf16.mxu0 %v3256_v9 }
  0x56   :  { %2953 = vmatpush3.bf16.msra.mxu1 %v3271_v16 }
  0x57   :  { %2923 = vmatpush3.bf16.msra.mxu0 %v3256_v9  ;;  %2954 = vmatprep.subr.bf16.mxu1 %v3272_v22 }
  0x58   :  { %2924 = vmatprep.subr.bf16.mxu0 %v3257_v11 }
  0x5a   :  { %2955 = vmatpush3.bf16.msra.mxu1 %v3272_v22 }
  0x5b   :  { %2925 = vmatpush3.bf16.msra.mxu0 %v3257_v11  ;;  %2956 = vmatprep.subr.bf16.mxu1 %v3273_v23 }
  0x5c   :  { %2974 = vmatprep.subr.bf16.mxu0 %v3274_v48 }
  0x5e   :  { %2927 = vmatmul.mubr.bf16.vlgmr.msra.gmra.mxu0 %v3259_v14  ;;  %2957 = vmatpush3.bf16.msra.mxu1 %v3273_v23 }
  0x5f   :  { %2930 = vmatprep.mubr.bf16.mxu0 %v3260_v15  ;;  %2975 = vmatpush3.bf16.msra.mxu0 %v3274_v48 }
  0x60   :  { %2976 = vmatprep.subr.bf16.mxu0 %v3275_v49 }
  0x63   :  { %2977 = vmatpush3.bf16.msra.mxu0 %v3275_v49 }
  0x64   :  { %2978 = vmatprep.subr.bf16.mxu0 %v3276_v50 }
  0x66   :  { %2931 = vmatmul.mubr.bf16.gmra.mxu0 %v3261_v17 }
  0x67   :  { %2934 = vmatprep.mubr.bf16.mxu0 %v3262_v18  ;;  %2979 = vmatpush3.bf16.msra.mxu0 %v3276_v50 }
  0x68   :  { %2980 = vmatprep.subr.bf16.mxu0 %v3277_v51 }
  0x6b   :  { %2981 = vmatpush3.bf16.msra.mxu0 %v3277_v51 }
  0x6c   :  { %2982 = vmatprep.subr.bf16.mxu0 %v3278_v52 }
  0x6e   :  { %2935 = vmatmul.mubr.bf16.gmra.mxu0 %v3530_v19 }
  0x6f   :  { %2938 = vmatprep.mubr.bf16.mxu0 %v3532_v20  ;;  %2983 = vmatpush3.bf16.msra.mxu0 %v3278_v52 }
  0x70   :  { %2984 = vmatprep.subr.bf16.mxu0 %v3279_v53 }
  0x73   :  { %2985 = vmatpush3.bf16.msra.mxu0 %v3279_v53 }
  0x74   :  { %2986 = vmatprep.subr.bf16.mxu0 %v3280_v54 }
  0x76   :  { %2939 = vmatmul.mubr.bf16.gmra.mxu0 %v3536_v21 }
  0x77   :  { %2987 = vmatpush3.bf16.msra.mxu0 %v3280_v54 }
  0x78   :  { %2988 = vmatprep.subr.bf16.mxu0 %v3281_v55 }
  0x7b   :  { %2989 = vmatpush3.bf16.msra.mxu0 %v3281_v55 }
 0x11e   :  { %v2928_v24 = vpop.f32.mrf.mxu0 }
 0x120   :  { %v348_v25 = vpop.f32.mrf.mxu0 }
 0x122   :  { %v2929_v26 = vpop.f32.mrf.mxu0 }
 0x123   :  { %v412_v29 = vpack.c.bf16 %v2929_v26, %v2928_v24 }
 0x124   :  { %v351_v27 = vpop.f32.mrf.mxu0 }
 0x125   :  { %v411_v28 = vpack.c.bf16 %v351_v27, %v348_v25 }
 0x126   :  { %v2932_v30 = vpop.f32.mrf.mxu0 }
 0x127   :  { %2958 = vmatprep.mubr.bf16.mxu1 %v411_v28 }
 0x128   :  { %v364_v31 = vpop.f32.mrf.mxu0  ;;  %2959 = vmatmul.mubr.bf16.vlgmr.msra.gmra.mxu1 %v412_v29 }
 0x12a   :  { %v2933_v32 = vpop.f32.mrf.mxu0 }
 0x12b   :  { %v414_v35 = vpack.c.bf16 %v2933_v32, %v2932_v30 }
 0x12c   :  { %v367_v33 = vpop.f32.mrf.mxu0 }
 0x12d   :  { %v413_v34 = vpack.c.bf16 %v367_v33, %v364_v31 }
 0x12e   :  { %v2936_v36 = vpop.f32.mrf.mxu0 }
 0x12f   :  { %2962 = vmatprep.mubr.bf16.mxu1 %v413_v34 }
 0x130   :  { %v380_v37 = vpop.f32.mrf.mxu0  ;;  %2963 = vmatmul.mubr.bf16.gmra.mxu1 %v414_v35 }
 0x132   :  { %v2937_v38 = vpop.f32.mrf.mxu0 }
 0x133   :  { %v416_v41 = vpack.c.bf16 %v2937_v38, %v2936_v36 }
 0x134   :  { %v383_v39 = vpop.f32.mrf.mxu0 }
 0x135   :  { %v415_v40 = vpack.c.bf16 %v383_v39, %v380_v37 }
 0x136   :  { %v2940_v42 = vpop.f32.mrf.mxu0 }
 0x137   :  { %2966 = vmatprep.mubr.bf16.mxu1 %v415_v40 }
 0x138   :  { %v396_v43 = vpop.f32.mrf.mxu0  ;;  %2967 = vmatmul.mubr.bf16.gmra.mxu1 %v416_v41 }
 0x13a   :  { %v2941_v44 = vpop.f32.mrf.mxu0 }
 0x13b   :  { %v418_v47 = vpack.c.bf16 %v2941_v44, %v2940_v42 }
 0x13c   :  { %v399_v45 = vpop.f32.mrf.mxu0 }
 0x13d   :  { %v417_v46 = vpack.c.bf16 %v399_v45, %v396_v43 }
 0x13f   :  { %2970 = vmatprep.mubr.bf16.mxu1 %v417_v46 }
 0x140   :  { %2971 = vmatmul.mubr.bf16.gmra.mxu1 %v418_v47 }
 0x141   :  { %3022 = vmatprep.mubr.bf16.mxu1 %v3527_v4 }
 0x1e8   :  { %v2960_v56 = vpop.f32.mrf.mxu1 }
 0x1e9   :  { %v3543_v59 = vadd.f32 %v2960_v56, %v3540_v57 }
 0x1ea   :  { %v506_v58 = vpop.f32.mrf.mxu1 }
 0x1eb   :  { %v3546_v61 = vadd.f32 %v3540_v57, %v506_v58  ;;  %v571_v0 = vmul.f32 0.0, %v3543_v59 }
 0x1ec   :  { %v2961_v60 = vpop.f32.mrf.mxu1 }
 0x1ed   :  { %v3549_v62 = vadd.f32 %v2961_v60, %v3540_v57  ;;  %v606_v4 = vmul.f32 %v3546_v61, %v3546_v61  ;;  %v608_v8 = vmul.f32 %v571_v0, %v3543_v59 }
 0x1ee   :  { %v509_v63 = vpop.f32.mrf.mxu1 }
 0x1ef   :  { %v3553_v1 = vadd.f32 %v3540_v57, %v509_v63  ;;  %v572_v2 = vmul.f32 0.0, %v3549_v62 }
 0x1f0   :  { %v2964_v3 = vpop.f32.mrf.mxu1 }
 0x1f1   :  { %v585_v5 = vadd.f32 %v3553_v1, %v3546_v61  ;;  %v607_v6 = vmul.f32 %v3553_v1, %v3553_v1  ;;  %v609_v12 = vmul.f32 %v572_v2, %v3549_v62  ;;  %v3568_v15 = vadd.f32 %v2964_v3, %v3540_v57 }
 0x1f2   :  { %v522_v7 = vpop.f32.mrf.mxu1 }
 0x1f3   :  { %v586_v9 = vadd.f32 %v585_v5, %v571_v0  ;;  %v622_v10 = vadd.f32 %v607_v6, %v606_v4  ;;  %v3564_v11 = vadd.f32 %v3540_v57, %v522_v7  ;;  %v575_v27 = vmul.f32 0.0, %v3568_v15 }
 0x1f4   :  { %v2965_v13 = vpop.f32.mrf.mxu1 }
 0x1f5   :  { %v623_v14 = vadd.f32 %v622_v10, %v608_v8  ;;  %v573_v16 = vmul.f32 0.0, %v3564_v11  ;;  %v587_v17 = vadd.f32 %v586_v9, %v572_v2  ;;  %v3572_v18 = vadd.f32 %v2965_v13, %v3540_v57 }
 0x1f6   :  { %v525_v22 = vpop.f32.mrf.mxu1  ;;  %v612_v38 = vmul.f32 %v575_v27, %v3568_v15 }
 0x1f7   :  { %v610_v23 = vmul.f32 %v573_v16, %v3564_v11  ;;  %v624_v24 = vadd.f32 %v623_v14, %v609_v12  ;;  %v3576_v25 = vadd.f32 %v3540_v57, %v525_v22  ;;  %v588_v28 = vadd.f32 %v587_v17, %v573_v16 }
 0x1f8   :  { %v2968_v26 = vpop.f32.mrf.mxu1  ;;  %v576_v30 = vmul.f32 0.0, %v3572_v18 }
 0x1f9   :  { %v574_v29 = vmul.f32 0.0, %v3576_v25  ;;  %v625_v32 = vadd.f32 %v624_v24, %v610_v23  ;;  %v3586_v36 = vadd.f32 %v2968_v26, %v3540_v57 }
 0x1fa   :  { %v538_v31 = vpop.f32.mrf.mxu1  ;;  %v613_v44 = vmul.f32 %v576_v30, %v3572_v18 }
 0x1fb   :  { %v589_v33 = vadd.f32 %v588_v28, %v574_v29  ;;  %v611_v34 = vmul.f32 %v574_v29, %v3576_v25  ;;  %v3583_v35 = vadd.f32 %v3540_v57, %v538_v31  ;;  %v579_v48 = vmul.f32 0.0, %v3586_v36 }
 0x1fc   :  { %v2969_v37 = vpop.f32.mrf.mxu1 }
 0x1fd   :  { %v590_v39 = vadd.f32 %v589_v33, %v575_v27  ;;  %v626_v40 = vadd.f32 %v625_v32, %v611_v34  ;;  %v577_v41 = vmul.f32 0.0, %v3583_v35  ;;  %v3591_v42 = vadd.f32 %v2969_v37, %v3540_v57 }
 0x1fe   :  { %v541_v43 = vpop.f32.mrf.mxu1  ;;  %v616_v3 = vmul.f32 %v579_v48, %v3586_v36 }
 0x1ff   :  { %v627_v45 = vadd.f32 %v626_v40, %v612_v38  ;;  %v591_v46 = vadd.f32 %v590_v39, %v576_v30  ;;  %v3595_v47 = vadd.f32 %v3540_v57, %v541_v43  ;;  %v614_v51 = vmul.f32 %v577_v41, %v3583_v35 }
 0x200   :  { %v2972_v49 = vpop.f32.mrf.mxu1  ;;  %v580_v54 = vmul.f32 0.0, %v3591_v42 }
 0x201   :  { %v592_v50 = vadd.f32 %v591_v46, %v577_v41  ;;  %v628_v52 = vadd.f32 %v627_v45, %v613_v44  ;;  %v578_v53 = vmul.f32 0.0, %v3595_v47  ;;  %v3603_v63 = vadd.f32 %v2972_v49, %v3540_v57 }
 0x202   :  { %v554_v55 = vpop.f32.mrf.mxu1  ;;  %v617_v6 = vmul.f32 %v580_v54, %v3591_v42 }
 0x203   :  { %v629_v56 = vadd.f32 %v628_v52, %v614_v51  ;;  %v593_v58 = vadd.f32 %v592_v50, %v578_v53  ;;  %v615_v60 = vmul.f32 %v578_v53, %v3595_v47  ;;  %v3606_v0 = vadd.f32 %v3540_v57, %v554_v55 }
 0x204   :  { %v2973_v2 = vpop.f32.mrf.mxu1  ;;  %v583_v14 = vmul.f32 0.0, %v3603_v63 }
 0x205   :  { %v594_v4 = vadd.f32 %v593_v58, %v579_v48  ;;  %v630_v5 = vadd.f32 %v629_v56, %v615_v60  ;;  %v581_v7 = vmul.f32 0.0, %v3606_v0  ;;  %v3612_v12 = vadd.f32 %v2973_v2, %v3540_v57  ;;  %v648_v2 = vld [vmem:[#allocation10 + $0x1] sm:$0x1] }
 0x206   :  { %v557_v8 = vpop.f32.mrf.mxu1  ;;  %v620_v29 = vmul.f32 %v583_v14, %v3603_v63  ;;  %v655_v58 = vlaneseq }
 0x207   :  { %v631_v9 = vadd.f32 %v630_v5, %v616_v3  ;;  %v595_v10 = vadd.f32 %v594_v4, %v580_v54  ;;  %v558_v13 = vadd.f32 %v3540_v57, %v557_v8  ;;  %v618_v17 = vmul.f32 %v581_v7, %v3606_v0 }
 0x208   :  { %v584_v26 = vmul.f32 0.0, %v3612_v12  ;;  %v656_v60 = vshrl.u32 %v655_v58, 7 }
 0x209   :  { %v596_v16 = vadd.f32 %v595_v10, %v581_v7  ;;  %v632_v22 = vadd.f32 %v631_v9, %v617_v6  ;;  %v582_v23 = vmul.f32 0.0, %v558_v13  ;;  %v652_v6 = vld [vmem:[#allocation10 + $0x2] sm:$0x1] }
 0x20a   :  { %v621_v32 = vmul.f32 %v584_v26, %v3612_v12  ;;  %v3620_v3 = vsub.s32 0, %v656_v60 }
 0x20b   :  { %v633_v24 = vadd.f32 %v632_v22, %v618_v17  ;;  %v597_v27 = vadd.f32 %v596_v16, %v582_v23  ;;  %v619_v28 = vmul.f32 %v582_v23, %v558_v13 }
 0x20d   :  { %v598_v30 = vadd.f32 %v597_v27, %v583_v14  ;;  %v634_v31 = vadd.f32 %v633_v24, %v619_v28 }
 0x20f   :  { %v599_v33 = vadd.f32 %v598_v30, %v584_v26  ;;  %v635_v57 = vadd.f32 %v634_v31, %v620_v29 }
 0x211   :  { %v600_v34 = vrot.slane %v599_v33, 4  ;;  %v636_v37 = vadd.f32 %v635_v57, %v621_v32 }
 0x213   :  { %v601_v38 = vadd.f32 %v600_v34, %v599_v33  ;;  %v637_v39 = vrot.slane %v636_v37, 4 }
 0x215   :  { %v602_v40 = vrot.slane %v601_v38, 2  ;;  %v638_v41 = vadd.f32 %v637_v39, %v636_v37 }
 0x217   :  { %v603_v43 = vadd.f32 %v602_v40, %v601_v38  ;;  %v639_v44 = vrot.slane %v638_v41, 2 }
 0x219   :  { %v604_v45 = vrot.slane %v603_v43, 1  ;;  %v640_v46 = vadd.f32 %v639_v44, %v638_v41 }
 0x21b   :  { %v605_v48 = vadd.f32 %v604_v45, %v603_v43  ;;  %v641_v49 = vrot.slane %v640_v46, 1 }
 0x21d   :  { %v642_v50 = vadd.f32 %v641_v49, %v640_v46  ;;  %v643_v51 = vmul.f32 0.0625, %v605_v48 }
 0x21f   :  { %v644_v52 = vmul.f32 0.0625, %v642_v50  ;;  %v645_v53 = vmul.f32 %v643_v51, %v643_v51 }
 0x221   :  { %v646_v54 = vsub.f32 %v644_v52, %v645_v53 }
 0x223   :  { %v647_v55 = vmax.f32 %v646_v54, 0.0 }
 0x225   :  { %v649_v56 = vadd.f32 1e-05, %v647_v55 }
 0x227   :  { %3322 = vrsqrt.f32 %v649_v56 }
 0x234   :  { %v3323_v4 = vpop.eup %3322 }
 0x235   :  { %v651_v5 = vmul.f32 %v3323_v4, %v648_v2 }
 0x237   :  { %v653_v7 = vmul.f32 %v651_v5, %v643_v51  ;;  %v658_v8 = vrot.slane %v651_v5, %v3620_v3 }
 0x239   :  { %v654_v9 = vsub.f32 %v652_v6, %v653_v7  ;;  %v659_v10 = vmul.f32 %v658_v8, %v3546_v61  ;;  %v660_v16 = vmul.f32 %v658_v8, %v3553_v1  ;;  %v661_v17 = vmul.f32 %v658_v8, %v3543_v59 }
 0x23a   :  { %v662_v22 = vmul.f32 %v658_v8, %v3549_v62  ;;  %v672_v23 = vmul.f32 %v658_v8, %v558_v13  ;;  %v663_v24 = vmul.f32 %v658_v8, %v3564_v11  ;;  %v664_v26 = vmul.f32 %v658_v8, %v3576_v25 }
 0x23b   :  { %v678_v14 = vrot.slane %v654_v9, %v3620_v3  ;;  %v665_v27 = vmul.f32 %v658_v8, %v3568_v15  ;;  %v667_v33 = vmul.f32 %v658_v8, %v3583_v35  ;;  %v668_v1 = vmul.f32 %v658_v8, %v3595_v47 }
 0x23c   :  { %v666_v25 = vmul.f32 %v658_v8, %v3572_v18  ;;  %v671_v15 = vmul.f32 %v658_v8, %v3606_v0  ;;  %v669_v52 = vmul.f32 %v658_v8, %v3586_v36  ;;  %v670_v53 = vmul.f32 %v658_v8, %v3591_v42 }
 0x23d   :  { %v679_v28 = vadd.f32 %v678_v14, %v659_v10  ;;  %v680_v29 = vadd.f32 %v678_v14, %v660_v16  ;;  %v681_v30 = vadd.f32 %v678_v14, %v661_v17  ;;  %v682_v31 = vadd.f32 %v678_v14, %v662_v22  ;;  %v3639_v16 = vld [vmem:[#allocation10 + $0x3] ss:$0 sm:$0xff] }
 0x23e   :  { %v683_v61 = vadd.f32 %v678_v14, %v663_v24  ;;  %v684_v32 = vadd.f32 %v678_v14, %v664_v26  ;;  %v687_v39 = vadd.f32 %v678_v14, %v667_v33  ;;  %v688_v40 = vadd.f32 %v678_v14, %v668_v1 }
 0x23f   :  { %v695_v59 = vmax.f32 %v679_v28, 0.0  ;;  %v696_v57 = vmax.f32 %v680_v29, 0.0  ;;  %v697_v62 = vmax.f32 %v681_v30, 0.0  ;;  %v698_v13 = vmax.f32 %v682_v31, 0.0 }
 0x240   :  { %v699_v34 = vmax.f32 %v683_v61, 0.0  ;;  %v700_v11 = vmax.f32 %v684_v32, 0.0  ;;  %v685_v43 = vadd.f32 %v678_v14, %v665_v27  ;;  %v686_v44 = vadd.f32 %v678_v14, %v666_v25 }
 0x241   :  { %v711_v37 = vpack.c.bf16 %v696_v57, %v695_v59  ;;  %v712_v38 = vpack.c.bf16 %v698_v13, %v697_v62  ;;  %v703_v35 = vmax.f32 %v687_v39, 0.0  ;;  %v704_v47 = vmax.f32 %v688_v40, 0.0 }
 0x242   :  { %v713_v41 = vpack.c.bf16 %v700_v11, %v699_v34  ;;  %v691_v45 = vadd.f32 %v678_v14, %v671_v15  ;;  %v692_v46 = vadd.f32 %v678_v14, %v672_v23  ;;  %v701_v18 = vmax.f32 %v685_v43, 0.0 }
 0x243   :  { %2990 = vmatprep.mubr.bf16.mxu0 %v711_v37  ;;  %v715_v48 = vpack.c.bf16 %v704_v47, %v703_v35  ;;  %v702_v51 = vmax.f32 %v686_v44, 0.0  ;;  %v689_v55 = vadd.f32 %v678_v14, %v669_v52  ;;  %v690_v56 = vadd.f32 %v678_v14, %v670_v53 }
 0x244   :  { %2991 = vmatmul.mubr.bf16.vlgmr.msra.gmra.mxu0 %v712_v38  ;;  %v707_v49 = vmax.f32 %v691_v45, 0.0  ;;  %v708_v50 = vmax.f32 %v692_v46, 0.0  ;;  %v673_v2 = vmul.f32 %v658_v8, %v3603_v63  ;;  %v674_v4 = vmul.f32 %v658_v8, %v3612_v12 }
 0x245   :  { %2994 = vmatprep.mubr.bf16.mxu0 %v713_v41  ;;  %v714_v54 = vpack.c.bf16 %v702_v51, %v701_v18  ;;  %v705_v58 = vmax.f32 %v689_v55, 0.0  ;;  %v706_v60 = vmax.f32 %v690_v56, 0.0  ;;  %v3283_v18 = vld [vmem:[#allocation8 + $0xb0] sm:$0xff]  }
 0x246   :  { %v717_v0 = vpack.c.bf16 %v708_v50, %v707_v49  ;;  %v693_v6 = vadd.f32 %v678_v14, %v673_v2  ;;  %v694_v7 = vadd.f32 %v678_v14, %v674_v4  ;;  %v3282_v50 = vld [vmem:[#allocation8 + $0xb8] sm:$0xff]  }
 0x247   :  { %v716_v5 = vpack.c.bf16 %v706_v60, %v705_v58  ;;  %3038 = vmatprep.subr.bf16.mxu0 %v3282_v50 }
 0x248   :  { %v709_v9 = vmax.f32 %v693_v6, 0.0  ;;  %v710_v36 = vmax.f32 %v694_v7, 0.0  ;;  %3039 = vmatpush3.bf16.msra.mxu0 %v3282_v50  ;;  %v3284_v6 = vld [vmem:[#allocation8 + $0xa8] sm:$0xff]   ;;  %v3287_v50 = vld [vmem:[#allocation8 + $0x90] sm:$0xff]  }
 0x249   :  { %3040 = vmatprep.subr.bf16.mxu0 %v3283_v18 }
 0x24a   :  { %v718_v10 = vpack.c.bf16 %v710_v36, %v709_v9 }
 0x24c   :  { %2995 = vmatmul.mubr.bf16.gmra.mxu0 %v714_v54 }
 0x24d   :  { %2998 = vmatprep.mubr.bf16.mxu0 %v715_v48  ;;  %3041 = vmatpush3.bf16.msra.mxu0 %v3283_v18 }
 0x24e   :  { %3042 = vmatprep.subr.bf16.mxu0 %v3284_v6 }
 0x251   :  { %3043 = vmatpush3.bf16.msra.mxu0 %v3284_v6 }
 0x254   :  { %2999 = vmatmul.mubr.bf16.gmra.mxu0 %v716_v5 }
 0x255   :  { %3002 = vmatprep.mubr.bf16.mxu0 %v717_v0 }
 0x25c   :  { %3003 = vmatmul.mubr.bf16.gmra.mxu0 %v718_v10 }
 0x304   :  { %v2992_v42 = vpop.f32.mrf.mxu0 }
 0x305   :  { %v3642_v22 = vadd.f32 %v2992_v42, %v3639_v16 }
 0x306   :  { %v806_v17 = vpop.f32.mrf.mxu0 }
 0x307   :  { %v3645_v63 = vadd.f32 %v3639_v16, %v806_v17  ;;  %v871_v14 = vmul.f32 0.0, %v3642_v22 }
 0x308   :  { %v2993_v23 = vpop.f32.mrf.mxu0 }
 0x309   :  { %v3648_v12 = vadd.f32 %v2993_v23, %v3639_v16  ;;  %v906_v28 = vmul.f32 %v3645_v63, %v3645_v63  ;;  %v908_v61 = vmul.f32 %v871_v14, %v3642_v22 }
 0x30a   :  { %v809_v8 = vpop.f32.mrf.mxu0 }
 0x30b   :  { %v3652_v24 = vadd.f32 %v3639_v16, %v809_v8  ;;  %v872_v26 = vmul.f32 0.0, %v3648_v12 }
 0x30c   :  { %v2996_v27 = vpop.f32.mrf.mxu0 }
 0x30d   :  { %v885_v29 = vadd.f32 %v3652_v24, %v3645_v63  ;;  %v907_v30 = vmul.f32 %v3652_v24, %v3652_v24  ;;  %v909_v59 = vmul.f32 %v872_v26, %v3648_v12  ;;  %v3667_v13 = vadd.f32 %v2996_v27, %v3639_v16 }
 0x30e   :  { %v822_v31 = vpop.f32.mrf.mxu0 }
 0x30f   :  { %v886_v32 = vadd.f32 %v885_v29, %v871_v14  ;;  %v922_v33 = vadd.f32 %v907_v30, %v906_v28  ;;  %v3663_v1 = vadd.f32 %v3639_v16, %v822_v31  ;;  %v875_v41 = vmul.f32 0.0, %v3667_v13  ;;  %v3285_v28 = vld [vmem:[#allocation8 + $0xa0] sm:$0xff]  }
 0x310   :  { %v2997_v57 = vpop.f32.mrf.mxu0  ;;  %3044 = vmatprep.subr.bf16.mxu0 %v3285_v28 }
 0x311   :  { %v923_v62 = vadd.f32 %v922_v33, %v908_v61  ;;  %v873_v34 = vmul.f32 0.0, %v3663_v1  ;;  %v887_v11 = vadd.f32 %v886_v32, %v872_v26  ;;  %v3671_v25 = vadd.f32 %v2997_v57, %v3639_v16  ;;  %3045 = vmatpush3.bf16.msra.mxu0 %v3285_v28 }
 0x312   :  { %v825_v15 = vpop.f32.mrf.mxu0  ;;  %v912_v52 = vmul.f32 %v875_v41, %v3667_v13 }
 0x313   :  { %v910_v37 = vmul.f32 %v873_v34, %v3663_v1  ;;  %v924_v38 = vadd.f32 %v923_v62, %v909_v59  ;;  %v3675_v39 = vadd.f32 %v3639_v16, %v825_v15  ;;  %v888_v43 = vadd.f32 %v887_v11, %v873_v34 }
 0x314   :  { %v3000_v40 = vpop.f32.mrf.mxu0  ;;  %v876_v35 = vmul.f32 0.0, %v3671_v25 }
 0x315   :  { %v874_v44 = vmul.f32 0.0, %v3675_v39  ;;  %v925_v45 = vadd.f32 %v924_v38, %v910_v37  ;;  %v3685_v51 = vadd.f32 %v3000_v40, %v3639_v16  ;;  %v3286_v38 = vld [vmem:[#allocation8 + $0x98] sm:$0xff]  }
 0x316   :  { %v838_v47 = vpop.f32.mrf.mxu0  ;;  %v913_v60 = vmul.f32 %v876_v35, %v3671_v25  ;;  %3046 = vmatprep.subr.bf16.mxu0 %v3286_v38 }
 0x317   :  { %v889_v46 = vadd.f32 %v888_v43, %v874_v44  ;;  %v911_v48 = vmul.f32 %v874_v44, %v3675_v39  ;;  %v3682_v49 = vadd.f32 %v3639_v16, %v838_v47  ;;  %v879_v7 = vmul.f32 0.0, %v3685_v51  ;;  %3047 = vmatpush3.bf16.msra.mxu0 %v3286_v38 }
 0x318   :  { %v3001_v0 = vpop.f32.mrf.mxu0  ;;  %3048 = vmatprep.subr.bf16.mxu0 %v3287_v50 }
 0x319   :  { %v890_v53 = vadd.f32 %v889_v46, %v875_v41  ;;  %v926_v54 = vadd.f32 %v925_v45, %v911_v48  ;;  %v877_v55 = vmul.f32 0.0, %v3682_v49  ;;  %v3690_v56 = vadd.f32 %v3001_v0, %v3639_v16 }
 0x31a   :  { %v841_v58 = vpop.f32.mrf.mxu0  ;;  %v916_v61 = vmul.f32 %v879_v7, %v3685_v51 }
 0x31b   :  { %v927_v2 = vadd.f32 %v926_v54, %v912_v52  ;;  %v891_v4 = vadd.f32 %v890_v53, %v876_v35  ;;  %v3694_v5 = vadd.f32 %v3639_v16, %v841_v58  ;;  %v914_v10 = vmul.f32 %v877_v55, %v3682_v49  ;;  %3049 = vmatpush3.bf16.msra.mxu0 %v3287_v50 }
 0x31c   :  { %v3004_v9 = vpop.f32.mrf.mxu0  ;;  %v880_v23 = vmul.f32 0.0, %v3690_v56 }
 0x31d   :  { %v892_v36 = vadd.f32 %v891_v4, %v877_v55  ;;  %v928_v42 = vadd.f32 %v927_v2, %v913_v60  ;;  %v878_v17 = vmul.f32 0.0, %v3694_v5  ;;  %v3702_v29 = vadd.f32 %v3004_v9, %v3639_v16 }
 0x31e   :  { %v854_v8 = vpop.f32.mrf.mxu0  ;;  %v917_v59 = vmul.f32 %v880_v23, %v3690_v56 }
 0x31f   :  { %v929_v14 = vadd.f32 %v928_v42, %v914_v10  ;;  %v893_v26 = vadd.f32 %v892_v36, %v878_v17  ;;  %v915_v27 = vmul.f32 %v878_v17, %v3694_v5  ;;  %v3705_v30 = vadd.f32 %v3639_v16, %v854_v8 }
 0x320   :  { %v3005_v31 = vpop.f32.mrf.mxu0  ;;  %v883_v40 = vmul.f32 0.0, %v3702_v29 }
 0x321   :  { %v894_v32 = vadd.f32 %v893_v26, %v879_v7  ;;  %v930_v33 = vadd.f32 %v929_v14, %v915_v27  ;;  %v881_v57 = vmul.f32 0.0, %v3705_v30  ;;  %v866_v15 = vadd.f32 %v3005_v31, %v3639_v16 }
 0x322   :  { %v857_v62 = vpop.f32.mrf.mxu0  ;;  %v920_v18 = vmul.f32 %v883_v40, %v3702_v29 }
 0x323   :  { %v931_v34 = vadd.f32 %v930_v33, %v916_v61  ;;  %v895_v11 = vadd.f32 %v894_v32, %v880_v23  ;;  %v858_v37 = vadd.f32 %v3639_v16, %v857_v62  ;;  %v918_v43 = vmul.f32 %v881_v57, %v3705_v30  ;;  %v948_v61 = vld [vmem:[#allocation10 + $0x4] sm:$0x1] }
 0x324   :  { %v884_v45 = vmul.f32 0.0, %v866_v15 }
 0x325   :  { %v896_v41 = vadd.f32 %v895_v11, %v881_v57  ;;  %v932_v44 = vadd.f32 %v931_v34, %v917_v59  ;;  %v882_v35 = vmul.f32 0.0, %v858_v37  ;;  %v952_v59 = vld [vmem:[#allocation10 + $0x5] sm:$0x1] }
 0x326   :  { %v921_v52 = vmul.f32 %v884_v45, %v866_v15 }
 0x327   :  { %v933_v47 = vadd.f32 %v932_v44, %v918_v43  ;;  %v897_v46 = vadd.f32 %v896_v41, %v882_v35  ;;  %v919_v48 = vmul.f32 %v882_v35, %v858_v37 }
 0x329   :  { %v898_v0 = vadd.f32 %v897_v46, %v883_v40  ;;  %v934_v16 = vadd.f32 %v933_v47, %v919_v48 }
 0x32b   :  { %v899_v53 = vadd.f32 %v898_v0, %v884_v45  ;;  %v935_v54 = vadd.f32 %v934_v16, %v920_v18 }
 0x32d   :  { %v900_v55 = vrot.slane %v899_v53, 4  ;;  %v936_v58 = vadd.f32 %v935_v54, %v921_v52 }
 0x32f   :  { %v901_v60 = vadd.f32 %v900_v55, %v899_v53  ;;  %v937_v2 = vrot.slane %v936_v58, 4 }
 0x331   :  { %v902_v4 = vrot.slane %v901_v60, 2  ;;  %v938_v6 = vadd.f32 %v937_v2, %v936_v58 }
 0x333   :  { %v903_v7 = vadd.f32 %v902_v4, %v901_v60  ;;  %v939_v9 = vrot.slane %v938_v6, 2 }
 0x335   :  { %v904_v36 = vrot.slane %v903_v7, 1  ;;  %v940_v10 = vadd.f32 %v939_v9, %v938_v6 }
 0x337   :  { %v905_v42 = vadd.f32 %v904_v36, %v903_v7  ;;  %v941_v17 = vrot.slane %v940_v10, 1 }
 0x339   :  { %v942_v23 = vadd.f32 %v941_v17, %v940_v10  ;;  %v943_v8 = vmul.f32 0.0625, %v905_v42 }
 0x33b   :  { %v944_v14 = vmul.f32 0.0625, %v942_v23  ;;  %v945_v26 = vmul.f32 %v943_v8, %v943_v8 }
 0x33d   :  { %v946_v27 = vsub.f32 %v944_v14, %v945_v26 }
 0x33f   :  { %v947_v28 = vmax.f32 %v946_v27, 0.0 }
 0x341   :  { %v949_v31 = vadd.f32 1e-05, %v947_v28 }
 0x343   :  { %3324 = vrsqrt.f32 %v949_v31 }
 0x350   :  { %v3325_v32 = vpop.eup %3324 }
 0x351   :  { %v951_v33 = vmul.f32 %v3325_v32, %v948_v61 }
 0x353   :  { %v953_v57 = vmul.f32 %v951_v33, %v943_v8  ;;  %v958_v62 = vrot.slane %v951_v33, %v3620_v3 }
 0x355   :  { %v954_v34 = vsub.f32 %v952_v59, %v953_v57  ;;  %v972_v11 = vmul.f32 %v958_v62, %v858_v37  ;;  %v973_v40 = vmul.f32 %v958_v62, %v3702_v29  ;;  %v974_v41 = vmul.f32 %v958_v62, %v866_v15 }
 0x356   :  { %v971_v43 = vmul.f32 %v958_v62, %v3705_v30  ;;  %v969_v44 = vmul.f32 %v958_v62, %v3685_v51  ;;  %v970_v35 = vmul.f32 %v958_v62, %v3690_v56  ;;  %v967_v47 = vmul.f32 %v958_v62, %v3682_v49 }
 0x357   :  { %v978_v38 = vrot.slane %v954_v34, %v3620_v3  ;;  %v968_v45 = vmul.f32 %v958_v62, %v3694_v5  ;;  %v965_v60 = vmul.f32 %v958_v62, %v3667_v13  ;;  %v966_v2 = vmul.f32 %v958_v62, %v3671_v25 }
 0x358   :  { %v963_v9 = vmul.f32 %v958_v62, %v3663_v1  ;;  %v964_v36 = vmul.f32 %v958_v62, %v3675_v39  ;;  %v961_v8 = vmul.f32 %v958_v62, %v3642_v22  ;;  %v962_v13 = vmul.f32 %v958_v62, %v3648_v12 }
 0x359   :  { %v993_v46 = vadd.f32 %v978_v38, %v973_v40  ;;  %v994_v48 = vadd.f32 %v978_v38, %v974_v41  ;;  %v991_v50 = vadd.f32 %v978_v38, %v971_v43  ;;  %v992_v18 = vadd.f32 %v978_v38, %v972_v11  ;;  %v3731_v11 = vld [vmem:[#allocation5 + $0x8] sm:$0xff]  }
 0x35a   :  { %v989_v37 = vadd.f32 %v978_v38, %v969_v44  ;;  %v990_v0 = vadd.f32 %v978_v38, %v970_v35  ;;  %v987_v16 = vadd.f32 %v978_v38, %v967_v47  ;;  %v988_v52 = vadd.f32 %v978_v38, %v968_v45  ;;  %v3289_v40 = vld [vmem:[#allocation8 + $0x80] sm:$0xff]  }
 0x35b   :  { %v1009_v29 = vmax.f32 %v993_v46, 0.0  ;;  %v1010_v15 = vmax.f32 %v994_v48, 0.0  ;;  %v1007_v53 = vmax.f32 %v991_v50, 0.0  ;;  %v1008_v30 = vmax.f32 %v992_v18, 0.0 }
 0x35c   :  { %v1003_v54 = vmax.f32 %v987_v16, 0.0  ;;  %v1004_v51 = vmax.f32 %v988_v52, 0.0  ;;  %v1005_v58 = vmax.f32 %v989_v37, 0.0  ;;  %v1006_v5 = vmax.f32 %v990_v0, 0.0 }
 0x35d   :  { %v1018_v55 = vpack.c.bf16 %v1010_v15, %v1009_v29  ;;  %v1017_v49 = vpack.c.bf16 %v1008_v30, %v1007_v53  ;;  %v985_v6 = vadd.f32 %v978_v38, %v965_v60  ;;  %v986_v7 = vadd.f32 %v978_v38, %v966_v2  ;;  %v3293_v60 = vld [vmem:[#allocation8 + $0xe0] sm:$0xff]   ;;  %v3294_v2 = vld [vmem:[#allocation8 + $0xd8] sm:$0xff]  }
 0x35e   :  { %v1015_v56 = vpack.c.bf16 %v1004_v51, %v1003_v54  ;;  %v1016_v4 = vpack.c.bf16 %v1006_v5, %v1005_v58  ;;  %v983_v17 = vadd.f32 %v978_v38, %v963_v9  ;;  %v984_v23 = vadd.f32 %v978_v38, %v964_v36  ;;  %v3291_v58 = vld [vmem:[#allocation8 + $0xf0] sm:$0xff]   ;;  %v3292_v5 = vld [vmem:[#allocation8 + $0xe8] sm:$0xff]  }
 0x35f   :  { %3006 = vmatprep.subr.bf16.mxu1 %v1018_v55  ;;  %v1001_v10 = vmax.f32 %v985_v6, 0.0  ;;  %v1002_v42 = vmax.f32 %v986_v7, 0.0  ;;  %v981_v25 = vadd.f32 %v978_v38, %v961_v8  ;;  %v982_v28 = vadd.f32 %v978_v38, %v962_v13  ;;  %v3296_v6 = vld [vmem:[#allocation8 + $0xc8] sm:$0xff]   ;;  %v3297_v7 = vld [vmem:[#allocation8 + $0xc0] sm:$0xff]  }
 0x360   :  { %3007 = vmatpush3.bf16.msra.mxu1 %v1018_v55  ;;  %v999_v26 = vmax.f32 %v983_v17, 0.0  ;;  %v1000_v27 = vmax.f32 %v984_v23, 0.0  ;;  %v959_v1 = vmul.f32 %v958_v62, %v3645_v63  ;;  %v960_v39 = vmul.f32 %v958_v62, %v3652_v24  ;;  %v3734_v63 = vld [vmem:[#allocation5 + $0x10] sm:$0xff]   ;;  %v3737_v24 = vld [vmem:[#allocation5 + $0x18] sm:$0xff]   ;;  %v3740_v62 = vld [vmem:[#allocation5 + $0x20] sm:$0xff]  }
 0x361   :  { %3008 = vmatprep.subr.bf16.mxu1 %v1017_v49  ;;  %v1014_v14 = vpack.c.bf16 %v1002_v42, %v1001_v10  ;;  %v997_v31 = vmax.f32 %v981_v25, 0.0  ;;  %v998_v32 = vmax.f32 %v982_v28, 0.0  ;;  %v3746_v36 = vld [vmem:[#allocation10 + $0x8] ss:$0 sm:$0xff] }
 0x362   :  { %v1013_v61 = vpack.c.bf16 %v1000_v27, %v999_v26  ;;  %v979_v33 = vadd.f32 %v978_v38, %v959_v1  ;;  %v980_v59 = vadd.f32 %v978_v38, %v960_v39  ;;  %v3288_v38 = vld [vmem:[#allocation8 + $0x88] sm:$0xff]  }
 0x363   :  { %v1012_v22 = vpack.c.bf16 %v998_v32, %v997_v31  ;;  %3050 = vmatprep.subr.bf16.mxu0 %v3288_v38 }
 0x364   :  { %3009 = vmatpush3.bf16.msra.mxu1 %v1017_v49  ;;  %v995_v12 = vmax.f32 %v979_v33, 0.0  ;;  %v996_v57 = vmax.f32 %v980_v59, 0.0  ;;  %3051 = vmatpush3.bf16.msra.mxu0 %v3288_v38  ;;  %v3290_v49 = vld [vmem:[#allocation8 + $0xf8] sm:$0xff]  }
 0x365   :  { %3010 = vmatprep.subr.bf16.mxu1 %v1016_v4  ;;  %3052 = vmatprep.subr.bf16.mxu0 %v3289_v40 }
 0x366   :  { %v1011_v34 = vpack.c.bf16 %v996_v57, %v995_v12 }
 0x368   :  { %3011 = vmatpush3.bf16.msra.mxu1 %v1016_v4  ;;  %3053 = vmatpush3.bf16.msra.mxu0 %v3289_v40  ;;  %v3295_v4 = vld [vmem:[#allocation8 + $0xd0] sm:$0xff]  }
 0x369   :  { %3012 = vmatprep.subr.bf16.mxu1 %v1015_v56 }
 0x36c   :  { %3013 = vmatpush3.bf16.msra.mxu1 %v1015_v56  ;;  %v3338_v56 = vld [vmem:[#allocation5] sm:$0xff]  }
 0x36d   :  { %3014 = vmatprep.subr.bf16.mxu1 %v1014_v14 }
 0x370   :  { %3015 = vmatpush3.bf16.msra.mxu1 %v1014_v14 }
 0x371   :  { %3016 = vmatprep.subr.bf16.mxu1 %v1013_v61 }
 0x374   :  { %3017 = vmatpush3.bf16.msra.mxu1 %v1013_v61 }
 0x375   :  { %3018 = vmatprep.subr.bf16.mxu1 %v1012_v22 }
 0x378   :  { %3019 = vmatpush3.bf16.msra.mxu1 %v1012_v22 }
 0x379   :  { %3020 = vmatprep.subr.bf16.mxu1 %v1011_v34 }
 0x37c   :  { %3021 = vmatpush3.bf16.msra.mxu1 %v1011_v34 }
 0x37d   :  { %3070 = vmatprep.subr.bf16.mxu1 %v3290_v49 }
 0x37f   :  { %3023 = vmatmul.mubr.bf16.vlgmr.msra.gmra.mxu1 %v3731_v11 }
 0x380   :  { %3026 = vmatprep.mubr.bf16.mxu1 %v3734_v63  ;;  %3071 = vmatpush3.bf16.msra.mxu1 %v3290_v49 }
 0x381   :  { %3072 = vmatprep.subr.bf16.mxu1 %v3291_v58 }
 0x384   :  { %3073 = vmatpush3.bf16.msra.mxu1 %v3291_v58 }
 0x385   :  { %3074 = vmatprep.subr.bf16.mxu1 %v3292_v5 }
 0x387   :  { %3027 = vmatmul.mubr.bf16.gmra.mxu1 %v3737_v24 }
 0x388   :  { %3030 = vmatprep.mubr.bf16.mxu1 %v3740_v62  ;;  %3075 = vmatpush3.bf16.msra.mxu1 %v3292_v5 }
 0x389   :  { %3076 = vmatprep.subr.bf16.mxu1 %v3293_v60 }
 0x38c   :  { %3077 = vmatpush3.bf16.msra.mxu1 %v3293_v60 }
 0x38d   :  { %3078 = vmatprep.subr.bf16.mxu1 %v3294_v2 }
 0x38f   :  { %3031 = vmatmul.mubr.bf16.gmra.mxu1 %v3530_v19 }
 0x390   :  { %3034 = vmatprep.mubr.bf16.mxu1 %v3532_v20  ;;  %3079 = vmatpush3.bf16.msra.mxu1 %v3294_v2 }
 0x391   :  { %3080 = vmatprep.subr.bf16.mxu1 %v3295_v4 }
 0x394   :  { %3081 = vmatpush3.bf16.msra.mxu1 %v3295_v4 }
 0x395   :  { %3082 = vmatprep.subr.bf16.mxu1 %v3296_v6 }
 0x397   :  { %3035 = vmatmul.mubr.bf16.gmra.mxu1 %v3536_v21 }
 0x398   :  { %3083 = vmatpush3.bf16.msra.mxu1 %v3296_v6 }
 0x399   :  { %3084 = vmatprep.subr.bf16.mxu1 %v3297_v7 }
 0x39c   :  { %3085 = vmatpush3.bf16.msra.mxu1 %v3297_v7 }
 0x43f   :  { %v3024_v41 = vpop.f32.mrf.mxu1 }
 0x441   :  { %v1087_v43 = vpop.f32.mrf.mxu1 }
 0x443   :  { %v3025_v44 = vpop.f32.mrf.mxu1 }
 0x444   :  { %v1151_v45 = vpack.c.bf16 %v3025_v44, %v3024_v41 }
 0x445   :  { %v1090_v35 = vpop.f32.mrf.mxu1 }
 0x446   :  { %v1150_v47 = vpack.c.bf16 %v1090_v35, %v1087_v43 }
 0x447   :  { %v3028_v46 = vpop.f32.mrf.mxu1 }
 0x448   :  { %3054 = vmatprep.mubr.bf16.mxu0 %v1150_v47 }
 0x449   :  { %v1103_v48 = vpop.f32.mrf.mxu1  ;;  %3055 = vmatmul.mubr.bf16.vlgmr.msra.gmra.mxu0 %v1151_v45 }
 0x44b   :  { %v3029_v19 = vpop.f32.mrf.mxu1 }
 0x44c   :  { %v1153_v21 = vpack.c.bf16 %v3029_v19, %v3028_v46 }
 0x44d   :  { %v1106_v20 = vpop.f32.mrf.mxu1 }
 0x44e   :  { %v1152_v50 = vpack.c.bf16 %v1106_v20, %v1103_v48 }
 0x44f   :  { %v3032_v18 = vpop.f32.mrf.mxu1 }
 0x450   :  { %3058 = vmatprep.mubr.bf16.mxu0 %v1152_v50 }
 0x451   :  { %v1119_v37 = vpop.f32.mrf.mxu1  ;;  %3059 = vmatmul.mubr.bf16.gmra.mxu0 %v1153_v21 }
 0x453   :  { %v3033_v0 = vpop.f32.mrf.mxu1 }
 0x454   :  { %v1155_v29 = vpack.c.bf16 %v3033_v0, %v3032_v18 }
 0x455   :  { %v1122_v16 = vpop.f32.mrf.mxu1 }
 0x456   :  { %v1154_v52 = vpack.c.bf16 %v1122_v16, %v1119_v37 }
 0x457   :  { %v3036_v15 = vpop.f32.mrf.mxu1 }
 0x458   :  { %3062 = vmatprep.mubr.bf16.mxu0 %v1154_v52 }
 0x459   :  { %v1135_v53 = vpop.f32.mrf.mxu1  ;;  %3063 = vmatmul.mubr.bf16.gmra.mxu0 %v1155_v29 }
 0x45b   :  { %v3037_v30 = vpop.f32.mrf.mxu1 }
 0x45c   :  { %v1157_v55 = vpack.c.bf16 %v3037_v30, %v3036_v15 }
 0x45d   :  { %v1138_v54 = vpop.f32.mrf.mxu1 }
 0x45e   :  { %v1156_v51 = vpack.c.bf16 %v1138_v54, %v1135_v53 }
 0x460   :  { %3066 = vmatprep.mubr.bf16.mxu0 %v1156_v51 }
 0x461   :  { %3067 = vmatmul.mubr.bf16.gmra.mxu0 %v1157_v55 }
 0x462   :  { %3118 = vmatprep.mubr.bf16.mxu0 %v3338_v56 }
 0x509   :  { %v3056_v9 = vpop.f32.mrf.mxu0 }
 0x50a   :  { %v3749_v42 = vadd.f32 %v3056_v9, %v3746_v36 }
 0x50b   :  { %v1245_v10 = vpop.f32.mrf.mxu0 }
 0x50c   :  { %v3752_v23 = vadd.f32 %v3746_v36, %v1245_v10  ;;  %v1310_v25 = vmul.f32 0.0, %v3749_v42 }
 0x50d   :  { %v3057_v17 = vpop.f32.mrf.mxu0 }
 0x50e   :  { %v3755_v8 = vadd.f32 %v3057_v17, %v3746_v36  ;;  %v1345_v28 = vmul.f32 %v3752_v23, %v3752_v23  ;;  %v1347_v61 = vmul.f32 %v1310_v25, %v3749_v42 }
 0x50f   :  { %v1248_v13 = vpop.f32.mrf.mxu0 }
 0x510   :  { %v3759_v14 = vadd.f32 %v3746_v36, %v1248_v13  ;;  %v1311_v26 = vmul.f32 0.0, %v3755_v8 }
 0x511   :  { %v3060_v27 = vpop.f32.mrf.mxu0 }
 0x512   :  { %v1324_v1 = vadd.f32 %v3759_v14, %v3752_v23  ;;  %v1346_v39 = vmul.f32 %v3759_v14, %v3759_v14  ;;  %v1348_v22 = vmul.f32 %v1311_v26, %v3755_v8  ;;  %v3774_v34 = vadd.f32 %v3060_v27, %v3746_v36 }
 0x513   :  { %v1261_v31 = vpop.f32.mrf.mxu0 }
 0x514   :  { %v1325_v32 = vadd.f32 %v1324_v1, %v1310_v25  ;;  %v1361_v33 = vadd.f32 %v1346_v39, %v1345_v28  ;;  %v3770_v59 = vadd.f32 %v3746_v36, %v1261_v31  ;;  %v1314_v46 = vmul.f32 0.0, %v3774_v34 }
 0x515   :  { %v3061_v12 = vpop.f32.mrf.mxu0 }
 0x516   :  { %v1362_v57 = vadd.f32 %v1361_v33, %v1347_v61  ;;  %v1312_v38 = vmul.f32 0.0, %v3770_v59  ;;  %v1326_v40 = vadd.f32 %v1325_v32, %v1311_v26  ;;  %v3778_v41 = vadd.f32 %v3061_v12, %v3746_v36 }
 0x517   :  { %v1264_v43 = vpop.f32.mrf.mxu0  ;;  %v1351_v29 = vmul.f32 %v1314_v46, %v3774_v34 }
 0x518   :  { %v1349_v44 = vmul.f32 %v1312_v38, %v3770_v59  ;;  %v1363_v35 = vadd.f32 %v1362_v57, %v1348_v22  ;;  %v3782_v47 = vadd.f32 %v3746_v36, %v1264_v43  ;;  %v1327_v48 = vadd.f32 %v1326_v40, %v1312_v38 }
 0x519   :  { %v3064_v45 = vpop.f32.mrf.mxu0  ;;  %v1315_v20 = vmul.f32 0.0, %v3778_v41 }
 0x51a   :  { %v1313_v19 = vmul.f32 0.0, %v3782_v47  ;;  %v1364_v21 = vadd.f32 %v1363_v35, %v1349_v44  ;;  %v3792_v16 = vadd.f32 %v3064_v45, %v3746_v36 }
 0x51b   :  { %v1277_v50 = vpop.f32.mrf.mxu0  ;;  %v1352_v55 = vmul.f32 %v1315_v20, %v3778_v41 }
 0x51c   :  { %v1328_v18 = vadd.f32 %v1327_v48, %v1313_v19  ;;  %v1350_v37 = vmul.f32 %v1313_v19, %v3782_v47  ;;  %v3789_v0 = vadd.f32 %v3746_v36, %v1277_v50  ;;  %v1318_v5 = vmul.f32 0.0, %v3792_v16 }
 0x51d   :  { %v3065_v52 = vpop.f32.mrf.mxu0 }
 0x51e   :  { %v1329_v15 = vadd.f32 %v1328_v18, %v1314_v46  ;;  %v1365_v53 = vadd.f32 %v1364_v21, %v1350_v37  ;;  %v1316_v30 = vmul.f32 0.0, %v3789_v0  ;;  %v3797_v54 = vadd.f32 %v3065_v52, %v3746_v36 }
 0x51f   :  { %v1280_v51 = vpop.f32.mrf.mxu0  ;;  %v1355_v1 = vmul.f32 %v1318_v5, %v3792_v16 }
 0x520   :  { %v1366_v56 = vadd.f32 %v1365_v53, %v1351_v29  ;;  %v1330_v49 = vadd.f32 %v1329_v15, %v1315_v20  ;;  %v3801_v58 = vadd.f32 %v3746_v36, %v1280_v51  ;;  %v1353_v4 = vmul.f32 %v1316_v30, %v3789_v0 }
 0x521   :  { %v3068_v60 = vpop.f32.mrf.mxu0  ;;  %v1319_v9 = vmul.f32 0.0, %v3797_v54 }
 0x522   :  { %v1331_v2 = vadd.f32 %v1330_v49, %v1316_v30  ;;  %v1367_v6 = vadd.f32 %v1366_v56, %v1352_v55  ;;  %v1317_v7 = vmul.f32 0.0, %v3801_v58  ;;  %v3809_v26 = vadd.f32 %v3068_v60, %v3746_v36 }
 0x523   :  { %v1293_v10 = vpop.f32.mrf.mxu0  ;;  %v1356_v61 = vmul.f32 %v1319_v9, %v3797_v54 }
 0x524   :  { %v1368_v17 = vadd.f32 %v1367_v6, %v1353_v4  ;;  %v1332_v13 = vadd.f32 %v1331_v2, %v1317_v7  ;;  %v1354_v25 = vmul.f32 %v1317_v7, %v3801_v58  ;;  %v3812_v27 = vadd.f32 %v3746_v36, %v1293_v10 }
 0x525   :  { %v3069_v28 = vpop.f32.mrf.mxu0  ;;  %v1322_v40 = vmul.f32 0.0, %v3809_v26 }
 0x526   :  { %v1333_v39 = vadd.f32 %v1332_v13, %v1318_v5  ;;  %v1369_v31 = vadd.f32 %v1368_v17, %v1354_v25  ;;  %v1320_v32 = vmul.f32 0.0, %v3812_v27  ;;  %v3818_v57 = vadd.f32 %v3069_v28, %v3746_v36  ;;  %v1387_v28 = vld [vmem:[#allocation10 + $0x9] sm:$0x1] }
 0x527   :  { %v1296_v33 = vpop.f32.mrf.mxu0  ;;  %v1359_v50 = vmul.f32 %v1322_v40, %v3809_v26 }
 0x528   :  { %v1370_v22 = vadd.f32 %v1369_v31, %v1355_v1  ;;  %v1334_v12 = vadd.f32 %v1333_v39, %v1319_v9  ;;  %v1297_v38 = vadd.f32 %v3746_v36, %v1296_v33  ;;  %v1357_v44 = vmul.f32 %v1320_v32, %v3812_v27  ;;  %v1391_v31 = vld [vmem:[#allocation10 + $0xa] sm:$0x1] }
 0x529   :  { %v1323_v48 = vmul.f32 0.0, %v3818_v57 }
 0x52a   :  { %v1335_v43 = vadd.f32 %v1334_v12, %v1320_v32  ;;  %v1371_v35 = vadd.f32 %v1370_v22, %v1356_v61  ;;  %v1321_v45 = vmul.f32 0.0, %v1297_v38 }
 0x52b   :  { %v1360_v37 = vmul.f32 %v1323_v48, %v3818_v57 }
 0x52c   :  { %v1372_v46 = vadd.f32 %v1371_v35, %v1357_v44  ;;  %v1336_v19 = vadd.f32 %v1335_v43, %v1321_v45  ;;  %v1358_v20 = vmul.f32 %v1321_v45, %v1297_v38 }
 0x52e   :  { %v1337_v21 = vadd.f32 %v1336_v19, %v1322_v40  ;;  %v1373_v18 = vadd.f32 %v1372_v46, %v1358_v20 }
 0x530   :  { %v1338_v52 = vadd.f32 %v1337_v21, %v1323_v48  ;;  %v1374_v36 = vadd.f32 %v1373_v18, %v1359_v50 }
 0x532   :  { %v1339_v29 = vrot.slane %v1338_v52, 4  ;;  %v1375_v15 = vadd.f32 %v1374_v36, %v1360_v37 }
 0x534   :  { %v1340_v53 = vadd.f32 %v1339_v29, %v1338_v52  ;;  %v1376_v30 = vrot.slane %v1375_v15, 4 }
 0x536   :  { %v1341_v51 = vrot.slane %v1340_v53, 2  ;;  %v1377_v55 = vadd.f32 %v1376_v30, %v1375_v15 }
 0x538   :  { %v1342_v56 = vadd.f32 %v1341_v51, %v1340_v53  ;;  %v1378_v49 = vrot.slane %v1377_v55, 2 }
 0x53a   :  { %v1343_v5 = vrot.slane %v1342_v56, 1  ;;  %v1379_v60 = vadd.f32 %v1378_v49, %v1377_v55 }
 0x53c   :  { %v1344_v2 = vadd.f32 %v1343_v5, %v1342_v56  ;;  %v1380_v4 = vrot.slane %v1379_v60, 1 }
 0x53e   :  { %v1381_v6 = vadd.f32 %v1380_v4, %v1379_v60  ;;  %v1382_v7 = vmul.f32 0.0625, %v1344_v2 }
 0x540   :  { %v1383_v9 = vmul.f32 0.0625, %v1381_v6  ;;  %v1384_v10 = vmul.f32 %v1382_v7, %v1382_v7 }
 0x542   :  { %v1385_v17 = vsub.f32 %v1383_v9, %v1384_v10 }
 0x544   :  { %v1386_v13 = vmax.f32 %v1385_v17, 0.0 }
 0x546   :  { %v1388_v25 = vadd.f32 1e-05, %v1386_v13 }
 0x548   :  { %3326 = vrsqrt.f32 %v1388_v25 }
 0x555   :  { %v3327_v1 = vpop.eup %3326 }
 0x556   :  { %v1390_v39 = vmul.f32 %v3327_v1, %v1387_v28 }
 0x558   :  { %v1392_v61 = vmul.f32 %v1390_v39, %v1382_v7  ;;  %v1397_v32 = vrot.slane %v1390_v39, %v3620_v3 }
 0x55a   :  { %v1393_v33 = vsub.f32 %v1391_v31, %v1392_v61  ;;  %v1398_v22 = vmul.f32 %v1397_v32, %v3752_v23  ;;  %v1399_v40 = vmul.f32 %v1397_v32, %v3759_v14  ;;  %v1400_v43 = vmul.f32 %v1397_v32, %v3749_v42 }
 0x55b   :  { %v1401_v44 = vmul.f32 %v1397_v32, %v3755_v8  ;;  %v1411_v35 = vmul.f32 %v1397_v32, %v1297_v38  ;;  %v1402_v45 = vmul.f32 %v1397_v32, %v3770_v59  ;;  %v1403_v46 = vmul.f32 %v1397_v32, %v3782_v47 }
 0x55c   :  { %v1417_v12 = vrot.slane %v1393_v33, %v3620_v3  ;;  %v1404_v48 = vmul.f32 %v1397_v32, %v3774_v34  ;;  %v1406_v37 = vmul.f32 %v1397_v32, %v3789_v0  ;;  %v1407_v14 = vmul.f32 %v1397_v32, %v3801_v58 }
 0x55d   :  { %v1405_v47 = vmul.f32 %v1397_v32, %v3778_v41  ;;  %v1410_v34 = vmul.f32 %v1397_v32, %v3812_v27  ;;  %v1408_v7 = vmul.f32 %v1397_v32, %v3792_v16  ;;  %v1409_v9 = vmul.f32 %v1397_v32, %v3797_v54 }
 0x55e   :  { %v1418_v19 = vadd.f32 %v1417_v12, %v1398_v22  ;;  %v1419_v20 = vadd.f32 %v1417_v12, %v1399_v40  ;;  %v1420_v50 = vadd.f32 %v1417_v12, %v1400_v43  ;;  %v1421_v21 = vadd.f32 %v1417_v12, %v1401_v44  ;;  %v3843_v43 = vld [vmem:[#allocation10 + $0xb] ss:$0 sm:$0xff] }
 0x55f   :  { %v1422_v23 = vadd.f32 %v1417_v12, %v1402_v45  ;;  %v1423_v18 = vadd.f32 %v1417_v12, %v1403_v46  ;;  %v1426_v53 = vadd.f32 %v1417_v12, %v1406_v37  ;;  %v1427_v30 = vadd.f32 %v1417_v12, %v1407_v14 }
 0x560   :  { %v1434_v42 = vmax.f32 %v1418_v19, 0.0  ;;  %v1435_v52 = vmax.f32 %v1419_v20, 0.0  ;;  %v1436_v8 = vmax.f32 %v1420_v50, 0.0  ;;  %v1437_v38 = vmax.f32 %v1421_v21, 0.0 }
 0x561   :  { %v1438_v36 = vmax.f32 %v1422_v23, 0.0  ;;  %v1439_v59 = vmax.f32 %v1423_v18, 0.0  ;;  %v1424_v55 = vadd.f32 %v1417_v12, %v1404_v48  ;;  %v1425_v56 = vadd.f32 %v1417_v12, %v1405_v47 }
 0x562   :  { %v1450_v29 = vpack.c.bf16 %v1435_v52, %v1434_v42  ;;  %v1451_v15 = vpack.c.bf16 %v1437_v38, %v1436_v8  ;;  %v1442_v0 = vmax.f32 %v1426_v53, 0.0  ;;  %v1443_v58 = vmax.f32 %v1427_v30, 0.0 }
 0x563   :  { %v1452_v51 = vpack.c.bf16 %v1439_v59, %v1438_v36  ;;  %v1430_v49 = vadd.f32 %v1417_v12, %v1410_v34  ;;  %v1431_v5 = vadd.f32 %v1417_v12, %v1411_v35  ;;  %v1440_v41 = vmax.f32 %v1424_v55, 0.0 }
 0x564   :  { %3086 = vmatprep.mubr.bf16.mxu1 %v1450_v29  ;;  %v1454_v60 = vpack.c.bf16 %v1443_v58, %v1442_v0  ;;  %v1441_v6 = vmax.f32 %v1425_v56, 0.0  ;;  %v1428_v17 = vadd.f32 %v1417_v12, %v1408_v7  ;;  %v1429_v13 = vadd.f32 %v1417_v12, %v1409_v9 }
 0x565   :  { %3087 = vmatmul.mubr.bf16.vlgmr.msra.gmra.mxu1 %v1451_v15  ;;  %v1446_v2 = vmax.f32 %v1430_v49, 0.0  ;;  %v1447_v4 = vmax.f32 %v1431_v5, 0.0  ;;  %v1412_v1 = vmul.f32 %v1397_v32, %v3809_v26  ;;  %v1413_v39 = vmul.f32 %v1397_v32, %v3818_v57 }
 0x566   :  { %3090 = vmatprep.mubr.bf16.mxu1 %v1452_v51  ;;  %v1453_v10 = vpack.c.bf16 %v1441_v6, %v1440_v41  ;;  %v1444_v25 = vmax.f32 %v1428_v17, 0.0  ;;  %v1445_v28 = vmax.f32 %v1429_v13, 0.0  ;;  %v3298_v41 = vld [vmem:[#allocation8 + $0x138] sm:$0xff]   ;;  %v3299_v6 = vld [vmem:[#allocation8 + $0x130] sm:$0xff]  }
 0x567   :  { %v1456_v27 = vpack.c.bf16 %v1447_v4, %v1446_v2  ;;  %v1432_v61 = vadd.f32 %v1417_v12, %v1412_v1  ;;  %v1433_v33 = vadd.f32 %v1417_v12, %v1413_v39  ;;  %3134 = vmatprep.subr.bf16.mxu1 %v3298_v41 }
 0x568   :  { %v1455_v31 = vpack.c.bf16 %v1445_v28, %v1444_v25  ;;  %3135 = vmatpush3.bf16.msra.mxu1 %v3298_v41 }
 0x569   :  { %v1448_v22 = vmax.f32 %v1432_v61, 0.0  ;;  %v1449_v16 = vmax.f32 %v1433_v33, 0.0  ;;  %3136 = vmatprep.subr.bf16.mxu1 %v3299_v6  ;;  %v3300_v33 = vld [vmem:[#allocation8 + $0x128] sm:$0xff]  }
 0x56b   :  { %v1457_v40 = vpack.c.bf16 %v1449_v16, %v1448_v22 }
 0x56c   :  { %3137 = vmatpush3.bf16.msra.mxu1 %v3299_v6  ;;  %v3303_v6 = vld [vmem:[#allocation8 + $0x110] sm:$0xff]  }
 0x56d   :  { %3091 = vmatmul.mubr.bf16.gmra.mxu1 %v1453_v10  ;;  %3138 = vmatprep.subr.bf16.mxu1 %v3300_v33 }
 0x56e   :  { %3094 = vmatprep.mubr.bf16.mxu1 %v1454_v60 }
 0x570   :  { %3139 = vmatpush3.bf16.msra.mxu1 %v3300_v33 }
 0x575   :  { %3095 = vmatmul.mubr.bf16.gmra.mxu1 %v1455_v31 }
 0x576   :  { %3098 = vmatprep.mubr.bf16.mxu1 %v1456_v27 }
 0x57d   :  { %3099 = vmatmul.mubr.bf16.gmra.mxu1 %v1457_v40 }
 0x625   :  { %v3088_v54 = vpop.f32.mrf.mxu1 }
 0x626   :  { %v3846_v35 = vadd.f32 %v3088_v54, %v3843_v43 }
 0x627   :  { %v1545_v44 = vpop.f32.mrf.mxu1 }
 0x628   :  { %v3849_v26 = vadd.f32 %v3843_v43, %v1545_v44  ;;  %v1610_v12 = vmul.f32 0.0, %v3846_v35 }
 0x629   :  { %v3089_v45 = vpop.f32.mrf.mxu1 }
 0x62a   :  { %v3852_v57 = vadd.f32 %v3089_v45, %v3843_v43  ;;  %v1645_v20 = vmul.f32 %v3849_v26, %v3849_v26  ;;  %v1647_v18 = vmul.f32 %v1610_v12, %v3846_v35 }
 0x62b   :  { %v1548_v32 = vpop.f32.mrf.mxu1 }
 0x62c   :  { %v3856_v46 = vadd.f32 %v3843_v43, %v1548_v32  ;;  %v1611_v48 = vmul.f32 0.0, %v3852_v57 }
 0x62d   :  { %v3092_v19 = vpop.f32.mrf.mxu1 }
 0x62e   :  { %v1624_v50 = vadd.f32 %v3856_v46, %v3849_v26  ;;  %v1646_v21 = vmul.f32 %v3856_v46, %v3856_v46  ;;  %v1648_v52 = vmul.f32 %v1611_v48, %v3852_v57  ;;  %v3871_v36 = vadd.f32 %v3092_v19, %v3843_v43 }
 0x62f   :  { %v1561_v23 = vpop.f32.mrf.mxu1 }
 0x630   :  { %v1625_v37 = vadd.f32 %v1624_v50, %v1610_v12  ;;  %v1661_v14 = vadd.f32 %v1646_v21, %v1645_v20  ;;  %v3867_v42 = vadd.f32 %v3843_v43, %v1561_v23  ;;  %v1614_v55 = vmul.f32 0.0, %v3871_v36  ;;  %v3301_v50 = vld [vmem:[#allocation8 + $0x120] sm:$0xff]  }
 0x631   :  { %v3093_v8 = vpop.f32.mrf.mxu1  ;;  %3140 = vmatprep.subr.bf16.mxu1 %v3301_v50 }
 0x632   :  { %v1662_v38 = vadd.f32 %v1661_v14, %v1647_v18  ;;  %v1612_v59 = vmul.f32 0.0, %v3867_v42  ;;  %v1626_v47 = vadd.f32 %v1625_v37, %v1611_v48  ;;  %v3875_v34 = vadd.f32 %v3093_v8, %v3843_v43  ;;  %3141 = vmatpush3.bf16.msra.mxu1 %v3301_v50 }
 0x633   :  { %v1564_v29 = vpop.f32.mrf.mxu1  ;;  %v1651_v9 = vmul.f32 %v1614_v55, %v3871_v36 }
 0x634   :  { %v1649_v15 = vmul.f32 %v1612_v59, %v3867_v42  ;;  %v1663_v53 = vadd.f32 %v1662_v38, %v1648_v52  ;;  %v3879_v30 = vadd.f32 %v3843_v43, %v1564_v29  ;;  %v1627_v56 = vadd.f32 %v1626_v47, %v1612_v59 }
 0x635   :  { %v3096_v51 = vpop.f32.mrf.mxu1  ;;  %v1615_v58 = vmul.f32 0.0, %v3875_v34 }
 0x636   :  { %v1613_v0 = vmul.f32 0.0, %v3879_v30  ;;  %v1664_v5 = vadd.f32 %v1663_v53, %v1649_v15  ;;  %v3889_v27 = vadd.f32 %v3096_v51, %v3843_v43  ;;  %v3302_v51 = vld [vmem:[#allocation8 + $0x118] sm:$0xff]  }
 0x637   :  { %v1577_v49 = vpop.f32.mrf.mxu1  ;;  %v1652_v1 = vmul.f32 %v1615_v58, %v3875_v34  ;;  %3142 = vmatprep.subr.bf16.mxu1 %v3302_v51 }
 0x638   :  { %v1628_v60 = vadd.f32 %v1627_v56, %v1613_v0  ;;  %v1650_v2 = vmul.f32 %v1613_v0, %v3879_v30  ;;  %v3886_v4 = vadd.f32 %v3843_v43, %v1577_v49  ;;  %v1618_v22 = vmul.f32 0.0, %v3889_v27  ;;  %3143 = vmatpush3.bf16.msra.mxu1 %v3302_v51 }
 0x639   :  { %v3097_v7 = vpop.f32.mrf.mxu1  ;;  %3144 = vmatprep.subr.bf16.mxu1 %v3303_v6 }
 0x63a   :  { %v1629_v10 = vadd.f32 %v1628_v60, %v1614_v55  ;;  %v1665_v17 = vadd.f32 %v1664_v5, %v1650_v2  ;;  %v1616_v13 = vmul.f32 0.0, %v3886_v4  ;;  %v3894_v25 = vadd.f32 %v3097_v7, %v3843_v43 }
 0x63b   :  { %v1580_v28 = vpop.f32.mrf.mxu1  ;;  %v1655_v37 = vmul.f32 %v1618_v22, %v3889_v27 }
 0x63c   :  { %v1666_v39 = vadd.f32 %v1665_v17, %v1651_v9  ;;  %v1630_v31 = vadd.f32 %v1629_v10, %v1615_v58  ;;  %v3898_v61 = vadd.f32 %v3843_v43, %v1580_v28  ;;  %v1653_v54 = vmul.f32 %v1616_v13, %v3886_v4  ;;  %3145 = vmatpush3.bf16.msra.mxu1 %v3303_v6 }
 0x63d   :  { %v3100_v16 = vpop.f32.mrf.mxu1  ;;  %v1619_v32 = vmul.f32 0.0, %v3894_v25 }
 0x63e   :  { %v1631_v40 = vadd.f32 %v1630_v31, %v1616_v13  ;;  %v1667_v44 = vadd.f32 %v1666_v39, %v1652_v1  ;;  %v1617_v45 = vmul.f32 0.0, %v3898_v61  ;;  %v3906_v21 = vadd.f32 %v3100_v16, %v3843_v43 }
 0x63f   :  { %v1593_v12 = vpop.f32.mrf.mxu1  ;;  %v1656_v8 = vmul.f32 %v1619_v32, %v3894_v25 }
 0x640   :  { %v1668_v48 = vadd.f32 %v1667_v44, %v1653_v54  ;;  %v1632_v19 = vadd.f32 %v1631_v40, %v1617_v45  ;;  %v1654_v20 = vmul.f32 %v1617_v45, %v3898_v61  ;;  %v3909_v23 = vadd.f32 %v3843_v43, %v1593_v12 }
 0x641   :  { %v3101_v18 = vpop.f32.mrf.mxu1  ;;  %v1622_v55 = vmul.f32 0.0, %v3906_v21 }
 0x642   :  { %v1633_v14 = vadd.f32 %v1632_v19, %v1618_v22  ;;  %v1669_v52 = vadd.f32 %v1668_v48, %v1654_v20  ;;  %v1620_v38 = vmul.f32 0.0, %v3909_v23  ;;  %v1605_v15 = vadd.f32 %v3101_v18, %v3843_v43 }
 0x643   :  { %v1596_v59 = vpop.f32.mrf.mxu1  ;;  %v1659_v7 = vmul.f32 %v1622_v55, %v3906_v21 }
 0x644   :  { %v1670_v47 = vadd.f32 %v1669_v52, %v1655_v37  ;;  %v1634_v29 = vadd.f32 %v1633_v14, %v1619_v32  ;;  %v1597_v53 = vadd.f32 %v3843_v43, %v1596_v59  ;;  %v1657_v0 = vmul.f32 %v1620_v38, %v3909_v23  ;;  %v1687_v14 = vld [vmem:[#allocation10 + $0xc] sm:$0x1] }
 0x645   :  { %v1623_v60 = vmul.f32 0.0, %v1605_v15 }
 0x646   :  { %v1635_v56 = vadd.f32 %v1634_v29, %v1620_v38  ;;  %v1671_v58 = vadd.f32 %v1670_v47, %v1656_v8  ;;  %v1621_v49 = vmul.f32 0.0, %v1597_v53  ;;  %v1691_v38 = vld [vmem:[#allocation10 + $0xd] sm:$0x1] }
 0x647   :  { %v1660_v10 = vmul.f32 %v1623_v60, %v1605_v15 }
 0x648   :  { %v1672_v5 = vadd.f32 %v1671_v58, %v1657_v0  ;;  %v1636_v2 = vadd.f32 %v1635_v56, %v1621_v49  ;;  %v1658_v41 = vmul.f32 %v1621_v49, %v1597_v53 }
 0x64a   :  { %v1637_v9 = vadd.f32 %v1636_v2, %v1622_v55  ;;  %v1673_v43 = vadd.f32 %v1672_v5, %v1658_v41 }
 0x64c   :  { %v1638_v17 = vadd.f32 %v1637_v9, %v1623_v60  ;;  %v1674_v13 = vadd.f32 %v1673_v43, %v1659_v7 }
 0x64e   :  { %v1639_v28 = vrot.slane %v1638_v17, 4  ;;  %v1675_v1 = vadd.f32 %v1674_v13, %v1660_v10 }
 0x650   :  { %v1640_v39 = vadd.f32 %v1639_v28, %v1638_v17  ;;  %v1676_v31 = vrot.slane %v1675_v1, 4 }
 0x652   :  { %v1641_v33 = vrot.slane %v1640_v39, 2  ;;  %v1677_v22 = vadd.f32 %v1676_v31, %v1675_v1 }
 0x654   :  { %v1642_v16 = vadd.f32 %v1641_v33, %v1640_v39  ;;  %v1678_v40 = vrot.slane %v1677_v22, 2 }
 0x656   :  { %v1643_v54 = vrot.slane %v1642_v16, 1  ;;  %v1679_v44 = vadd.f32 %v1678_v40, %v1677_v22 }
 0x658   :  { %v1644_v45 = vadd.f32 %v1643_v54, %v1642_v16  ;;  %v1680_v32 = vrot.slane %v1679_v44, 1 }
 0x65a   :  { %v1681_v12 = vadd.f32 %v1680_v32, %v1679_v44  ;;  %v1682_v48 = vmul.f32 0.0625, %v1644_v45 }
 0x65c   :  { %v1683_v19 = vmul.f32 0.0625, %v1681_v12  ;;  %v1684_v20 = vmul.f32 %v1682_v48, %v1682_v48 }
 0x65e   :  { %v1685_v50 = vsub.f32 %v1683_v19, %v1684_v20 }
 0x660   :  { %v1686_v18 = vmax.f32 %v1685_v50, 0.0 }
 0x662   :  { %v1688_v37 = vadd.f32 1e-05, %v1686_v18 }
 0x664   :  { %3328 = vrsqrt.f32 %v1688_v37 }
 0x671   :  { %v3329_v52 = vpop.eup %3328 }
 0x672   :  { %v1690_v8 = vmul.f32 %v3329_v52, %v1687_v14 }
 0x674   :  { %v1692_v59 = vmul.f32 %v1690_v8, %v1682_v48  ;;  %v1697_v47 = vrot.slane %v1690_v8, %v3620_v3 }
 0x676   :  { %v1693_v29 = vsub.f32 %v1691_v38, %v1692_v59  ;;  %v1711_v51 = vmul.f32 %v1697_v47, %v1597_v53  ;;  %v1712_v56 = vmul.f32 %v1697_v47, %v3906_v21  ;;  %v1713_v0 = vmul.f32 %v1697_v47, %v1605_v15 }
 0x677   :  { %v1710_v58 = vmul.f32 %v1697_v47, %v3909_v23  ;;  %v1708_v49 = vmul.f32 %v1697_v47, %v3889_v27  ;;  %v1709_v5 = vmul.f32 %v1697_v47, %v3894_v25  ;;  %v1706_v60 = vmul.f32 %v1697_v47, %v3886_v4 }
 0x678   :  { %v1717_v55 = vrot.slane %v1693_v29, %v3620_v3  ;;  %v1707_v2 = vmul.f32 %v1697_v47, %v3898_v61  ;;  %v1704_v31 = vmul.f32 %v1697_v47, %v3871_v36  ;;  %v1705_v33 = vmul.f32 %v1697_v47, %v3875_v34 }
 0x679   :  { %v1702_v54 = vmul.f32 %v1697_v47, %v3867_v42  ;;  %v1703_v44 = vmul.f32 %v1697_v47, %v3879_v30  ;;  %v1700_v19 = vmul.f32 %v1697_v47, %v3846_v35  ;;  %v1701_v36 = vmul.f32 %v1697_v47, %v3852_v57 }
 0x67a   :  { %v1732_v41 = vadd.f32 %v1717_v55, %v1712_v56  ;;  %v1733_v6 = vadd.f32 %v1717_v55, %v1713_v0  ;;  %v1730_v7 = vadd.f32 %v1717_v55, %v1710_v58  ;;  %v1731_v9 = vadd.f32 %v1717_v55, %v1711_v51  ;;  %v3305_v56 = vld [vmem:[#allocation8 + $0x100] sm:$0xff]  }
 0x67b   :  { %v1728_v53 = vadd.f32 %v1717_v55, %v1708_v49  ;;  %v1729_v43 = vadd.f32 %v1717_v55, %v1709_v5  ;;  %v1726_v10 = vadd.f32 %v1717_v55, %v1706_v60  ;;  %v1727_v17 = vadd.f32 %v1717_v55, %v1707_v2 }
 0x67c   :  { %v1748_v21 = vmax.f32 %v1732_v41, 0.0  ;;  %v1749_v15 = vmax.f32 %v1733_v6, 0.0  ;;  %v1746_v13 = vmax.f32 %v1730_v7, 0.0  ;;  %v1747_v23 = vmax.f32 %v1731_v9, 0.0 }
 0x67d   :  { %v1742_v28 = vmax.f32 %v1726_v10, 0.0  ;;  %v1743_v27 = vmax.f32 %v1727_v17, 0.0  ;;  %v1744_v39 = vmax.f32 %v1728_v53, 0.0  ;;  %v1745_v61 = vmax.f32 %v1729_v43, 0.0 }
 0x67e   :  { %v1757_v1 = vpack.c.bf16 %v1749_v15, %v1748_v21  ;;  %v1756_v4 = vpack.c.bf16 %v1747_v23, %v1746_v13  ;;  %v1724_v16 = vadd.f32 %v1717_v55, %v1704_v31  ;;  %v1725_v40 = vadd.f32 %v1717_v55, %v1705_v33  ;;  %v3311_v31 = vld [vmem:[#allocation8 + $0x150] sm:$0xff]   ;;  %v3312_v33 = vld [vmem:[#allocation8 + $0x148] sm:$0xff]  }
 0x67f   :  { %v1754_v25 = vpack.c.bf16 %v1743_v27, %v1742_v28  ;;  %v1755_v22 = vpack.c.bf16 %v1745_v61, %v1744_v39  ;;  %v1722_v12 = vadd.f32 %v1717_v55, %v1702_v54  ;;  %v1723_v48 = vadd.f32 %v1717_v55, %v1703_v44  ;;  %v3309_v39 = vld [vmem:[#allocation8 + $0x160] sm:$0xff]   ;;  %v3310_v61 = vld [vmem:[#allocation8 + $0x158] sm:$0xff]  }
 0x680   :  { %3102 = vmatprep.subr.bf16.mxu0 %v1757_v1  ;;  %v1740_v45 = vmax.f32 %v1724_v16, 0.0  ;;  %v1741_v32 = vmax.f32 %v1725_v40, 0.0  ;;  %v1720_v34 = vadd.f32 %v1717_v55, %v1700_v19  ;;  %v1721_v37 = vadd.f32 %v1717_v55, %v1701_v36  ;;  %v3939_v40 = vld [vmem:[#allocation10 + $0x10] ss:$0 sm:$0xff] }
 0x681   :  { %3103 = vmatpush3.bf16.msra.mxu0 %v1757_v1  ;;  %v1738_v50 = vmax.f32 %v1722_v12, 0.0  ;;  %v1739_v18 = vmax.f32 %v1723_v48, 0.0  ;;  %v1698_v42 = vmul.f32 %v1697_v47, %v3849_v26  ;;  %v1699_v30 = vmul.f32 %v1697_v47, %v3856_v46  ;;  %v3339_v26 = vld [vmem:[#allocation5 + $0x28] sm:$0xff]   ;;  %v3340_v46 = vld [vmem:[#allocation5 + $0x30] sm:$0xff]   ;;  %v3341_v47 = vld [vmem:[#allocation5 + $0x38] sm:$0xff]  }
 0x682   :  { %3104 = vmatprep.subr.bf16.mxu0 %v1756_v4  ;;  %v1753_v20 = vpack.c.bf16 %v1741_v32, %v1740_v45  ;;  %v1736_v14 = vmax.f32 %v1720_v34, 0.0  ;;  %v1737_v8 = vmax.f32 %v1721_v37, 0.0  ;;  %v3306_v1 = vld [vmem:[#allocation8 + $0x178] sm:$0xff]  }
 0x683   :  { %v1752_v52 = vpack.c.bf16 %v1739_v18, %v1738_v50  ;;  %v1718_v38 = vadd.f32 %v1717_v55, %v1698_v42  ;;  %v1719_v59 = vadd.f32 %v1717_v55, %v1699_v30  ;;  %v3304_v55 = vld [vmem:[#allocation8 + $0x108] sm:$0xff]  }
 0x684   :  { %v1751_v35 = vpack.c.bf16 %v1737_v8, %v1736_v14  ;;  %3146 = vmatprep.subr.bf16.mxu1 %v3304_v55 }
 0x685   :  { %3105 = vmatpush3.bf16.msra.mxu0 %v1756_v4  ;;  %v1734_v57 = vmax.f32 %v1718_v38, 0.0  ;;  %v1735_v29 = vmax.f32 %v1719_v59, 0.0  ;;  %3147 = vmatpush3.bf16.msra.mxu1 %v3304_v55  ;;  %v3308_v4 = vld [vmem:[#allocation8 + $0x168] sm:$0xff]  }
 0x686   :  { %3106 = vmatprep.subr.bf16.mxu0 %v1755_v22  ;;  %3148 = vmatprep.subr.bf16.mxu1 %v3305_v56 }
 0x687   :  { %v1750_v51 = vpack.c.bf16 %v1735_v29, %v1734_v57 }
 0x689   :  { %3107 = vmatpush3.bf16.msra.mxu0 %v1755_v22  ;;  %3149 = vmatpush3.bf16.msra.mxu1 %v3305_v56  ;;  %v3313_v22 = vld [vmem:[#allocation8 + $0x140] sm:$0xff]  }
 0x68a   :  { %3108 = vmatprep.subr.bf16.mxu0 %v1754_v25 }
 0x68d   :  { %3109 = vmatpush3.bf16.msra.mxu0 %v1754_v25  ;;  %v3307_v25 = vld [vmem:[#allocation8 + $0x170] sm:$0xff]  }
 0x68e   :  { %3110 = vmatprep.subr.bf16.mxu0 %v1753_v20 }
 0x691   :  { %3111 = vmatpush3.bf16.msra.mxu0 %v1753_v20 }
 0x692   :  { %3112 = vmatprep.subr.bf16.mxu0 %v1752_v52 }
 0x695   :  { %3113 = vmatpush3.bf16.msra.mxu0 %v1752_v52 }
 0x696   :  { %3114 = vmatprep.subr.bf16.mxu0 %v1751_v35 }
 0x699   :  { %3115 = vmatpush3.bf16.msra.mxu0 %v1751_v35 }
 0x69a   :  { %3116 = vmatprep.subr.bf16.mxu0 %v1750_v51 }
 0x69d   :  { %3117 = vmatpush3.bf16.msra.mxu0 %v1750_v51 }
 0x69e   :  { %3166 = vmatprep.subr.bf16.mxu0 %v3306_v1 }
 0x6a0   :  { %3119 = vmatmul.mubr.bf16.vlgmr.msra.gmra.mxu0 %v3731_v11 }
 0x6a1   :  { %3122 = vmatprep.mubr.bf16.mxu0 %v3734_v63  ;;  %3167 = vmatpush3.bf16.msra.mxu0 %v3306_v1 }
 0x6a2   :  { %3168 = vmatprep.subr.bf16.mxu0 %v3307_v25 }
 0x6a5   :  { %3169 = vmatpush3.bf16.msra.mxu0 %v3307_v25 }
 0x6a6   :  { %3170 = vmatprep.subr.bf16.mxu0 %v3308_v4 }
 0x6a8   :  { %3123 = vmatmul.mubr.bf16.gmra.mxu0 %v3737_v24 }
 0x6a9   :  { %3126 = vmatprep.mubr.bf16.mxu0 %v3740_v62  ;;  %3171 = vmatpush3.bf16.msra.mxu0 %v3308_v4 }
 0x6aa   :  { %3172 = vmatprep.subr.bf16.mxu0 %v3309_v39 }
 0x6ad   :  { %3173 = vmatpush3.bf16.msra.mxu0 %v3309_v39 }
 0x6ae   :  { %3174 = vmatprep.subr.bf16.mxu0 %v3310_v61 }
 0x6b0   :  { %3127 = vmatmul.mubr.bf16.gmra.mxu0 %v3339_v26 }
 0x6b1   :  { %3130 = vmatprep.mubr.bf16.mxu0 %v3340_v46  ;;  %3175 = vmatpush3.bf16.msra.mxu0 %v3310_v61 }
 0x6b2   :  { %3176 = vmatprep.subr.bf16.mxu0 %v3311_v31 }
 0x6b5   :  { %3177 = vmatpush3.bf16.msra.mxu0 %v3311_v31 }
 0x6b6   :  { %3178 = vmatprep.subr.bf16.mxu0 %v3312_v33 }
 0x6b8   :  { %3131 = vmatmul.mubr.bf16.gmra.mxu0 %v3341_v47 }
 0x6b9   :  { %3179 = vmatpush3.bf16.msra.mxu0 %v3312_v33 }
 0x6ba   :  { %3180 = vmatprep.subr.bf16.mxu0 %v3313_v22 }
 0x6bd   :  { %3181 = vmatpush3.bf16.msra.mxu0 %v3313_v22 }
 0x760   :  { %v3120_v0 = vpop.f32.mrf.mxu0 }
 0x762   :  { %v1826_v11 = vpop.f32.mrf.mxu0 }
 0x764   :  { %v3121_v58 = vpop.f32.mrf.mxu0 }
 0x765   :  { %v1890_v24 = vpack.c.bf16 %v3121_v58, %v3120_v0 }
 0x766   :  { %v1829_v63 = vpop.f32.mrf.mxu0 }
 0x767   :  { %v1889_v49 = vpack.c.bf16 %v1829_v63, %v1826_v11 }
 0x768   :  { %v3124_v5 = vpop.f32.mrf.mxu0 }
 0x769   :  { %3150 = vmatprep.mubr.bf16.mxu1 %v1889_v49 }
 0x76a   :  { %v1842_v62 = vpop.f32.mrf.mxu0  ;;  %3151 = vmatmul.mubr.bf16.vlgmr.msra.gmra.mxu1 %v1890_v24 }
 0x76c   :  { %v3125_v60 = vpop.f32.mrf.mxu0 }
 0x76d   :  { %v1892_v6 = vpack.c.bf16 %v3125_v60, %v3124_v5 }
 0x76e   :  { %v1845_v2 = vpop.f32.mrf.mxu0 }
 0x76f   :  { %v1891_v41 = vpack.c.bf16 %v1845_v2, %v1842_v62 }
 0x770   :  { %v3128_v7 = vpop.f32.mrf.mxu0 }
 0x771   :  { %3154 = vmatprep.mubr.bf16.mxu1 %v1891_v41 }
 0x772   :  { %v1858_v9 = vpop.f32.mrf.mxu0  ;;  %3155 = vmatmul.mubr.bf16.gmra.mxu1 %v1892_v6 }
 0x774   :  { %v3129_v53 = vpop.f32.mrf.mxu0 }
 0x775   :  { %v1894_v17 = vpack.c.bf16 %v3129_v53, %v3128_v7 }
 0x776   :  { %v1861_v43 = vpop.f32.mrf.mxu0 }
 0x777   :  { %v1893_v10 = vpack.c.bf16 %v1861_v43, %v1858_v9 }
 0x778   :  { %v3132_v21 = vpop.f32.mrf.mxu0 }
 0x779   :  { %3158 = vmatprep.mubr.bf16.mxu1 %v1893_v10 }
 0x77a   :  { %v1874_v15 = vpop.f32.mrf.mxu0  ;;  %3159 = vmatmul.mubr.bf16.gmra.mxu1 %v1894_v17 }
 0x77c   :  { %v3133_v13 = vpop.f32.mrf.mxu0 }
 0x77d   :  { %v1896_v27 = vpack.c.bf16 %v3133_v13, %v3132_v21 }
 0x77e   :  { %v1877_v23 = vpop.f32.mrf.mxu0 }
 0x77f   :  { %v1895_v28 = vpack.c.bf16 %v1877_v23, %v1874_v15 }
 0x781   :  { %3162 = vmatprep.mubr.bf16.mxu1 %v1895_v28 }
 0x782   :  { %3163 = vmatmul.mubr.bf16.gmra.mxu1 %v1896_v27 }
 0x82a   :  { %v3152_v16 = vpop.f32.mrf.mxu1 }
 0x82b   :  { %v3942_v44 = vadd.f32 %v3152_v16, %v3939_v40 }
 0x82c   :  { %v1984_v54 = vpop.f32.mrf.mxu1 }
 0x82d   :  { %v3945_v32 = vadd.f32 %v3939_v40, %v1984_v54  ;;  %v2049_v19 = vmul.f32 0.0, %v3942_v44 }
 0x82e   :  { %v3153_v45 = vpop.f32.mrf.mxu1 }
 0x82f   :  { %v3948_v12 = vadd.f32 %v3153_v45, %v3939_v40  ;;  %v2084_v50 = vmul.f32 %v3945_v32, %v3945_v32  ;;  %v2086_v30 = vmul.f32 %v2049_v19, %v3942_v44 }
 0x830   :  { %v1987_v48 = vpop.f32.mrf.mxu1 }
 0x831   :  { %v3952_v36 = vadd.f32 %v3939_v40, %v1987_v48  ;;  %v2050_v34 = vmul.f32 0.0, %v3948_v12 }
 0x832   :  { %v3156_v20 = vpop.f32.mrf.mxu1 }
 0x833   :  { %v2063_v18 = vadd.f32 %v3952_v36, %v3945_v32  ;;  %v2085_v37 = vmul.f32 %v3952_v36, %v3952_v36  ;;  %v2087_v38 = vmul.f32 %v2050_v34, %v3948_v12  ;;  %v3967_v57 = vadd.f32 %v3156_v20, %v3939_v40 }
 0x834   :  { %v2000_v42 = vpop.f32.mrf.mxu1 }
 0x835   :  { %v2064_v14 = vadd.f32 %v2063_v18, %v2049_v19  ;;  %v2100_v52 = vadd.f32 %v2085_v37, %v2084_v50  ;;  %v3963_v8 = vadd.f32 %v3939_v40, %v2000_v42  ;;  %v2053_v11 = vmul.f32 0.0, %v3967_v57 }
 0x836   :  { %v3157_v59 = vpop.f32.mrf.mxu1 }
 0x837   :  { %v2101_v35 = vadd.f32 %v2100_v52, %v2086_v30  ;;  %v2051_v29 = vmul.f32 0.0, %v3963_v8  ;;  %v2065_v51 = vadd.f32 %v2064_v14, %v2050_v34  ;;  %v3971_v26 = vadd.f32 %v3157_v59, %v3939_v40 }
 0x838   :  { %v2003_v46 = vpop.f32.mrf.mxu1  ;;  %v2090_v7 = vmul.f32 %v2053_v11, %v3967_v57 }
 0x839   :  { %v2088_v47 = vmul.f32 %v2051_v29, %v3963_v8  ;;  %v2102_v55 = vadd.f32 %v2101_v35, %v2087_v38  ;;  %v3975_v56 = vadd.f32 %v3939_v40, %v2003_v46  ;;  %v2066_v58 = vadd.f32 %v2065_v51, %v2051_v29 }
 0x83a   :  { %v3160_v0 = vpop.f32.mrf.mxu1  ;;  %v2054_v49 = vmul.f32 0.0, %v3971_v26 }
 0x83b   :  { %v2052_v63 = vmul.f32 0.0, %v3975_v56  ;;  %v2103_v5 = vadd.f32 %v2102_v55, %v2088_v47  ;;  %v3985_v41 = vadd.f32 %v3160_v0, %v3939_v40 }
 0x83c   :  { %v2016_v24 = vpop.f32.mrf.mxu1  ;;  %v2091_v21 = vmul.f32 %v2054_v49, %v3971_v26 }
 0x83d   :  { %v2067_v62 = vadd.f32 %v2066_v58, %v2052_v63  ;;  %v2089_v60 = vmul.f32 %v2052_v63, %v3975_v56  ;;  %v3982_v2 = vadd.f32 %v3939_v40, %v2016_v24  ;;  %v2057_v28 = vmul.f32 0.0, %v3985_v41 }
 0x83e   :  { %v3161_v6 = vpop.f32.mrf.mxu1 }
 0x83f   :  { %v2068_v9 = vadd.f32 %v2067_v62, %v2053_v11  ;;  %v2104_v53 = vadd.f32 %v2103_v5, %v2089_v60  ;;  %v2055_v43 = vmul.f32 0.0, %v3982_v2  ;;  %v3990_v10 = vadd.f32 %v3161_v6, %v3939_v40 }
 0x840   :  { %v2019_v17 = vpop.f32.mrf.mxu1  ;;  %v2094_v19 = vmul.f32 %v2057_v28, %v3985_v41 }
 0x841   :  { %v2105_v15 = vadd.f32 %v2104_v53, %v2090_v7  ;;  %v2069_v13 = vadd.f32 %v2068_v9, %v2054_v49  ;;  %v3994_v23 = vadd.f32 %v3939_v40, %v2019_v17  ;;  %v2092_v25 = vmul.f32 %v2055_v43, %v3982_v2 }
 0x842   :  { %v3164_v27 = vpop.f32.mrf.mxu1  ;;  %v2058_v61 = vmul.f32 0.0, %v3990_v10 }
 0x843   :  { %v2070_v1 = vadd.f32 %v2069_v13, %v2055_v43  ;;  %v2106_v4 = vadd.f32 %v2105_v15, %v2091_v21  ;;  %v2056_v39 = vmul.f32 0.0, %v3994_v23  ;;  %v4002_v54 = vadd.f32 %v3164_v27, %v3939_v40 }
 0x844   :  { %v2032_v31 = vpop.f32.mrf.mxu1  ;;  %v2095_v50 = vmul.f32 %v2058_v61, %v3990_v10 }
 0x845   :  { %v2107_v33 = vadd.f32 %v2106_v4, %v2092_v25  ;;  %v2071_v22 = vadd.f32 %v2070_v1, %v2056_v39  ;;  %v2093_v16 = vmul.f32 %v2056_v39, %v3994_v23  ;;  %v4005_v45 = vadd.f32 %v3939_v40, %v2032_v31  ;;  %v2126_v31 = vld [vmem:[#allocation10 + $0x11] sm:$0x1] }
 0x846   :  { %v3165_v48 = vpop.f32.mrf.mxu1  ;;  %v2061_v38 = vmul.f32 0.0, %v4002_v54 }
 0x847   :  { %v2072_v34 = vadd.f32 %v2071_v22, %v2057_v28  ;;  %v2108_v20 = vadd.f32 %v2107_v33, %v2093_v16  ;;  %v2059_v18 = vmul.f32 0.0, %v4005_v45  ;;  %v4011_v14 = vadd.f32 %v3165_v48, %v3939_v40  ;;  %v2130_v16 = vld [vmem:[#allocation10 + $0x12] sm:$0x1] }
 0x848   :  { %v2035_v37 = vpop.f32.mrf.mxu1  ;;  %v2098_v11 = vmul.f32 %v2061_v38, %v4002_v54 }
 0x849   :  { %v2109_v42 = vadd.f32 %v2108_v20, %v2094_v19  ;;  %v2073_v30 = vadd.f32 %v2072_v34, %v2058_v61  ;;  %v2036_v52 = vadd.f32 %v3939_v40, %v2035_v37  ;;  %v2096_v35 = vmul.f32 %v2059_v18, %v4005_v45 }
 0x84a   :  { %v2062_v47 = vmul.f32 0.0, %v4011_v14 }
 0x84b   :  { %v2074_v59 = vadd.f32 %v2073_v30, %v2059_v18  ;;  %v2110_v29 = vadd.f32 %v2109_v42, %v2095_v50  ;;  %v2060_v51 = vmul.f32 0.0, %v2036_v52 }
 0x84c   :  { %v2099_v49 = vmul.f32 %v2062_v47, %v4011_v14 }
 0x84d   :  { %v2111_v46 = vadd.f32 %v2110_v29, %v2096_v35  ;;  %v2075_v55 = vadd.f32 %v2074_v59, %v2060_v51  ;;  %v2097_v0 = vmul.f32 %v2060_v51, %v2036_v52 }
 0x84f   :  { %v2076_v58 = vadd.f32 %v2075_v55, %v2061_v38  ;;  %v2112_v63 = vadd.f32 %v2111_v46, %v2097_v0 }
 0x851   :  { %v2077_v24 = vadd.f32 %v2076_v58, %v2062_v47  ;;  %v2113_v40 = vadd.f32 %v2112_v63, %v2098_v11 }
 0x853   :  { %v2078_v5 = vrot.slane %v2077_v24, 4  ;;  %v2114_v62 = vadd.f32 %v2113_v40, %v2099_v49 }
 0x855   :  { %v2079_v60 = vadd.f32 %v2078_v5, %v2077_v24  ;;  %v2115_v6 = vrot.slane %v2114_v62, 4 }
 0x857   :  { %v2080_v7 = vrot.slane %v2079_v60, 2  ;;  %v2116_v9 = vadd.f32 %v2115_v6, %v2114_v62 }
 0x859   :  { %v2081_v53 = vadd.f32 %v2080_v7, %v2079_v60  ;;  %v2117_v43 = vrot.slane %v2116_v9, 2 }
 0x85b   :  { %v2082_v17 = vrot.slane %v2081_v53, 1  ;;  %v2118_v21 = vadd.f32 %v2117_v43, %v2116_v9 }
 0x85d   :  { %v2083_v15 = vadd.f32 %v2082_v17, %v2081_v53  ;;  %v2119_v13 = vrot.slane %v2118_v21, 1 }
 0x85f   :  { %v2120_v28 = vadd.f32 %v2119_v13, %v2118_v21  ;;  %v2121_v27 = vmul.f32 0.0625, %v2083_v15 }
 0x861   :  { %v2122_v1 = vmul.f32 0.0625, %v2120_v28  ;;  %v2123_v25 = vmul.f32 %v2121_v27, %v2121_v27 }
 0x863   :  { %v2124_v4 = vsub.f32 %v2122_v1, %v2123_v25 }
 0x865   :  { %v2125_v39 = vmax.f32 %v2124_v4, 0.0 }
 0x867   :  { %v2127_v61 = vadd.f32 1e-05, %v2125_v39 }
 0x869   :  { %3330 = vrsqrt.f32 %v2127_v61 }
 0x876   :  { %v3331_v33 = vpop.eup %3330 }
 0x877   :  { %v2129_v22 = vmul.f32 %v3331_v33, %v2126_v31 }
 0x879   :  { %v2131_v48 = vmul.f32 %v2129_v22, %v2121_v27  ;;  %v2136_v19 = vrot.slane %v2129_v22, %v3620_v3 }
 0x87b   :  { %v2132_v34 = vsub.f32 %v2130_v16, %v2131_v48  ;;  %v2137_v20 = vmul.f32 %v2136_v19, %v3945_v32  ;;  %v2138_v18 = vmul.f32 %v2136_v19, %v3952_v36  ;;  %v2139_v37 = vmul.f32 %v2136_v19, %v3942_v44 }
 0x87c   :  { %v2140_v42 = vmul.f32 %v2136_v19, %v3948_v12  ;;  %v2150_v30 = vmul.f32 %v2136_v19, %v2036_v52  ;;  %v2141_v38 = vmul.f32 %v2136_v19, %v3963_v8  ;;  %v2142_v59 = vmul.f32 %v2136_v19, %v3975_v56 }
 0x87d   :  { %v2156_v50 = vrot.slane %v2132_v34, %v3620_v3  ;;  %v2143_v35 = vmul.f32 %v2136_v19, %v3967_v57  ;;  %v2145_v0 = vmul.f32 %v2136_v19, %v3982_v2  ;;  %v2146_v36 = vmul.f32 %v2136_v19, %v3994_v23  ;;  %v3316_v34 = vld [vmem:[#allocation8 + $0x1a8] sm:$0xff]  }
 0x87e   :  { %v2144_v56 = vmul.f32 %v2136_v19, %v3971_v26  ;;  %v2149_v57 = vmul.f32 %v2136_v19, %v4005_v45  ;;  %v2147_v21 = vmul.f32 %v2136_v19, %v3985_v41  ;;  %v2148_v15 = vmul.f32 %v2136_v19, %v3990_v10 }
 0x87f   :  { %v2157_v29 = vadd.f32 %v2156_v50, %v2137_v20  ;;  %v2158_v51 = vadd.f32 %v2156_v50, %v2138_v18  ;;  %v2159_v46 = vadd.f32 %v2156_v50, %v2139_v37  ;;  %v2160_v47 = vadd.f32 %v2156_v50, %v2140_v42  ;;  %v3317_v37 = vld [vmem:[#allocation8 + $0x1a0] sm:$0xff]  }
 0x880   :  { %v2161_v32 = vadd.f32 %v2156_v50, %v2141_v38  ;;  %v2162_v55 = vadd.f32 %v2156_v50, %v2142_v59  ;;  %v2165_v24 = vadd.f32 %v2156_v50, %v2145_v0  ;;  %v2166_v40 = vadd.f32 %v2156_v50, %v2146_v36 }
 0x881   :  { %v2173_v44 = vmax.f32 %v2157_v29, 0.0  ;;  %v2174_v11 = vmax.f32 %v2158_v51, 0.0  ;;  %v2175_v12 = vmax.f32 %v2159_v46, 0.0  ;;  %v2176_v52 = vmax.f32 %v2160_v47, 0.0  ;;  %v3318_v46 = vld [vmem:[#allocation8 + $0x198] sm:$0xff]  }
 0x882   :  { %v2177_v58 = vmax.f32 %v2161_v32, 0.0  ;;  %v2178_v8 = vmax.f32 %v2162_v55, 0.0  ;;  %v2163_v62 = vadd.f32 %v2156_v50, %v2143_v35  ;;  %v2164_v60 = vadd.f32 %v2156_v50, %v2144_v56 }
 0x883   :  { %v2189_v63 = vpack.c.bf16 %v2174_v11, %v2173_v44  ;;  %v2190_v49 = vpack.c.bf16 %v2176_v52, %v2175_v12  ;;  %v2181_v2 = vmax.f32 %v2165_v24, 0.0  ;;  %v2182_v23 = vmax.f32 %v2166_v40, 0.0 }
 0x884   :  { %v2191_v5 = vpack.c.bf16 %v2178_v8, %v2177_v58  ;;  %v2169_v6 = vadd.f32 %v2156_v50, %v2149_v57  ;;  %v2170_v7 = vadd.f32 %v2156_v50, %v2150_v30  ;;  %v2179_v26 = vmax.f32 %v2163_v62, 0.0  ;;  %v3319_v8 = vld [vmem:[#allocation8 + $0x190] sm:$0xff]  }
 0x885   :  { %3182 = vmatprep.mubr.bf16.mxu0 %v2189_v63  ;;  %v2193_v9 = vpack.c.bf16 %v2182_v23, %v2181_v2  ;;  %v2180_v17 = vmax.f32 %v2164_v60, 0.0  ;;  %v2167_v28 = vadd.f32 %v2156_v50, %v2147_v21  ;;  %v2168_v27 = vadd.f32 %v2156_v50, %v2148_v15  ;;  %v3320_v23 = vld [vmem:[#allocation8 + $0x188] sm:$0xff]  }
 0x886   :  { %3183 = vmatmul.mubr.bf16.vlgmr.msra.gmra.mxu0 %v2190_v49  ;;  %v2185_v53 = vmax.f32 %v2169_v6, 0.0  ;;  %v2186_v43 = vmax.f32 %v2170_v7, 0.0  ;;  %v2151_v4 = vmul.f32 %v2136_v19, %v4002_v54  ;;  %v2152_v39 = vmul.f32 %v2136_v19, %v4011_v14  ;;  %v3314_v54 = vld [vmem:[#allocation8 + $0x1b8] sm:$0xff]   ;;  %v3315_v14 = vld [vmem:[#allocation8 + $0x1b0] sm:$0xff]  }
 0x887   :  { %3186 = vmatprep.mubr.bf16.mxu0 %v2191_v5  ;;  %v2192_v13 = vpack.c.bf16 %v2180_v17, %v2179_v26  ;;  %v2183_v1 = vmax.f32 %v2167_v28, 0.0  ;;  %v2184_v25 = vmax.f32 %v2168_v27, 0.0  ;;  %v3479_v10 = vmov 0.0   ;;  %v4041_v19 = vld [vmem:[#allocation10 + $0x13] ss:$0 sm:$0xff] }
 0x888   :  { %v2195_v45 = vpack.c.bf16 %v2186_v43, %v2185_v53  ;;  %v2171_v31 = vadd.f32 %v2156_v50, %v2151_v4  ;;  %v2172_v33 = vadd.f32 %v2156_v50, %v2152_v39  ;;  %3198 = vmatprep.subr.bf16.mxu1 %v3479_v10  ;;  %3218 = vmatprep.subr.bf16.mxu0 %v3479_v10 }
 0x889   :  { %v2194_v61 = vpack.c.bf16 %v2184_v25, %v2183_v1  ;;  %3214 = vmatprep.mubr.msk.bf16.mxu1 %vm3480_vm0, %v3479_v10  ;;  %3219 = vmatpush3.bf16.msra.mxu0 %v3314_v54 }
 0x88a   :  { %v2187_v22 = vmax.f32 %v2171_v31, 0.0  ;;  %v2188_v41 = vmax.f32 %v2172_v33, 0.0  ;;  %3220 = vmatprep.subr.bf16.mxu0 %v3479_v10 }
 0x88c   :  { %v2196_v16 = vpack.c.bf16 %v2188_v41, %v2187_v22 }
 0x88d   :  { %3221 = vmatpush3.bf16.msra.mxu0 %v3315_v14 }
 0x88e   :  { %3187 = vmatmul.mubr.bf16.gmra.mxu0 %v2192_v13  ;;  %3222 = vmatprep.subr.bf16.mxu0 %v3479_v10 }
 0x88f   :  { %3190 = vmatprep.mubr.bf16.mxu0 %v2193_v9 }
 0x891   :  { %3223 = vmatpush3.bf16.msra.mxu0 %v3316_v34 }
 0x892   :  { %3224 = vmatprep.subr.bf16.mxu0 %v3479_v10 }
 0x895   :  { %3225 = vmatpush3.bf16.msra.mxu0 %v3317_v37 }
 0x896   :  { %3191 = vmatmul.mubr.bf16.gmra.mxu0 %v2194_v61  ;;  %3226 = vmatprep.subr.bf16.mxu0 %v3479_v10 }
 0x897   :  { %3194 = vmatprep.mubr.bf16.mxu0 %v2195_v45 }
 0x899   :  { %3227 = vmatpush3.bf16.msra.mxu0 %v3318_v46 }
 0x89a   :  { %3228 = vmatprep.subr.bf16.mxu0 %v3479_v10 }
 0x89d   :  { %3229 = vmatpush3.bf16.msra.mxu0 %v3319_v8 }
 0x89e   :  { %3195 = vmatmul.mubr.bf16.gmra.mxu0 %v2196_v16  ;;  %3230 = vmatprep.subr.bf16.mxu0 %v3479_v10 }
 0x89f   :  { %3234 = vmatprep.mubr.msk.bf16.mxu0 %vm3480_vm0, %v3479_v10 }
 0x8a1   :  { %3231 = vmatpush3.bf16.msra.mxu0 %v3320_v23 }
 0x8a2   :  { %3232 = vmatprep.subr.bf16.mxu0 %v3479_v10 }
 0x946   :  { %v3184_v48 = vpop.f32.mrf.mxu0 }
 0x947   :  { %v4045_v50 = vadd.f32 %v3184_v48, %v4041_v19 }
 0x948   :  { %v2284_v20 = vpop.f32.mrf.mxu0 }
 0x949   :  { %v4048_v42 = vadd.f32 %v4041_v19, %v2284_v20  ;;  %v2349_v59 = vmul.f32 0.0, %v4045_v50 }
 0x94a   :  { %v3185_v18 = vpop.f32.mrf.mxu0 }
 0x94b   :  { %v4051_v30 = vadd.f32 %v3185_v18, %v4041_v19  ;;  %v2384_v47 = vmul.f32 %v4048_v42, %v4048_v42  ;;  %v2386_v36 = vmul.f32 %v2349_v59, %v4045_v50 }
 0x94c   :  { %v2287_v38 = vpop.f32.mrf.mxu0 }
 0x94d   :  { %v4056_v35 = vadd.f32 %v4041_v19, %v2287_v38  ;;  %v2350_v29 = vmul.f32 0.0, %v4051_v30 }
 0x94e   :  { %v3188_v51 = vpop.f32.mrf.mxu0 }
 0x94f   :  { %v2363_v32 = vadd.f32 %v4056_v35, %v4048_v42  ;;  %v2385_v55 = vmul.f32 %v4056_v35, %v4056_v35  ;;  %v2387_v52 = vmul.f32 %v2350_v29, %v4051_v30  ;;  %v4072_v57 = vadd.f32 %v3188_v51, %v4041_v19 }
 0x950   :  { %v2300_v0 = vpop.f32.mrf.mxu0 }
 0x951   :  { %v2364_v44 = vadd.f32 %v2363_v32, %v2349_v59  ;;  %v2400_v11 = vadd.f32 %v2385_v55, %v2384_v47  ;;  %v4068_v12 = vadd.f32 %v4041_v19, %v2300_v0  ;;  %v2353_v6 = vmul.f32 0.0, %v4072_v57 }
 0x952   :  { %v3189_v58 = vpop.f32.mrf.mxu0 }
 0x953   :  { %v2401_v56 = vadd.f32 %v2400_v11, %v2386_v36  ;;  %v2351_v63 = vmul.f32 0.0, %v4068_v12  ;;  %v2365_v49 = vadd.f32 %v2364_v44, %v2350_v29  ;;  %v4077_v24 = vadd.f32 %v3189_v58, %v4041_v19 }
 0x954   :  { %v2303_v40 = vpop.f32.mrf.mxu0  ;;  %v2390_v28 = vmul.f32 %v2353_v6, %v4072_v57 }
 0x955   :  { %v2388_v5 = vmul.f32 %v2351_v63, %v4068_v12  ;;  %v2402_v62 = vadd.f32 %v2401_v56, %v2387_v52  ;;  %v4081_v60 = vadd.f32 %v4041_v19, %v2303_v40  ;;  %v2366_v7 = vadd.f32 %v2365_v49, %v2351_v63 }
 0x956   :  { %v3192_v2 = vpop.f32.mrf.mxu0  ;;  %v2354_v53 = vmul.f32 0.0, %v4077_v24 }
 0x957   :  { %v2352_v9 = vmul.f32 0.0, %v4081_v60  ;;  %v2403_v26 = vadd.f32 %v2402_v62, %v2388_v5  ;;  %v4092_v15 = vadd.f32 %v3192_v2, %v4041_v19 }
 0x958   :  { %v2316_v43 = vpop.f32.mrf.mxu0  ;;  %v2391_v61 = vmul.f32 %v2354_v53, %v4077_v24 }
 0x959   :  { %v2367_v17 = vadd.f32 %v2366_v7, %v2352_v9  ;;  %v2389_v45 = vmul.f32 %v2352_v9, %v4081_v60  ;;  %v4089_v21 = vadd.f32 %v4041_v19, %v2316_v43  ;;  %v2357_v41 = vmul.f32 0.0, %v4092_v15 }
 0x95a   :  { %v3193_v13 = vpop.f32.mrf.mxu0 }
 0x95b   :  { %v2368_v27 = vadd.f32 %v2367_v17, %v2353_v6  ;;  %v2404_v1 = vadd.f32 %v2403_v26, %v2389_v45  ;;  %v2355_v25 = vmul.f32 0.0, %v4089_v21  ;;  %v4098_v4 = vadd.f32 %v3193_v13, %v4041_v19 }
 0x95c   :  { %v2319_v39 = vpop.f32.mrf.mxu0  ;;  %v2394_v47 = vmul.f32 %v2357_v41, %v4092_v15 }
 0x95d   :  { %v2405_v31 = vadd.f32 %v2404_v1, %v2390_v28  ;;  %v2369_v33 = vadd.f32 %v2368_v27, %v2354_v53  ;;  %v4102_v22 = vadd.f32 %v4041_v19, %v2319_v39  ;;  %v2392_v14 = vmul.f32 %v2355_v25, %v4089_v21 }
 0x95e   :  { %v3196_v16 = vpop.f32.mrf.mxu0  ;;  %v2358_v20 = vmul.f32 0.0, %v4098_v4 }
 0x95f   :  { %v2370_v54 = vadd.f32 %v2369_v33, %v2355_v25  ;;  %v2406_v48 = vadd.f32 %v2405_v31, %v2391_v61  ;;  %v2356_v34 = vmul.f32 0.0, %v4102_v22  ;;  %v2341_v29 = vadd.f32 %v3196_v16, %v4041_v19 }
 0x960   :  { %v2332_v18 = vpop.f32.mrf.mxu0  ;;  %v2395_v0 = vmul.f32 %v2358_v20, %v4098_v4 }
 0x961   :  { %v2407_v37 = vadd.f32 %v2406_v48, %v2392_v14  ;;  %v2371_v38 = vadd.f32 %v2370_v54, %v2356_v34  ;;  %v2393_v59 = vmul.f32 %v2356_v34, %v4102_v22  ;;  %v2333_v51 = vadd.f32 %v4041_v19, %v2332_v18 }
 0x962   :  { %v3197_v46 = vpop.f32.mrf.mxu0  ;;  %v2361_v56 = vmul.f32 0.0, %v2341_v29 }
 0x963   :  { %v2372_v32 = vadd.f32 %v2371_v38, %v2357_v41  ;;  %v2408_v55 = vadd.f32 %v2407_v37, %v2393_v59  ;;  %v2359_v36 = vmul.f32 0.0, %v2333_v51  ;;  %v2344_v58 = vadd.f32 %v3197_v46, %v4041_v19  ;;  %v2426_v37 = vld [vmem:[#allocation10 + $0x14] sm:$0x1]  ;;  %v2430_v46 = vld [vmem:[#allocation10 + $0x15] sm:$0x1] }
 0x964   :  { %v2335_v44 = vpop.f32.mrf.mxu0  ;;  %v2398_v7 = vmul.f32 %v2361_v56, %v2341_v29 }
 0x965   :  { %v2409_v11 = vadd.f32 %v2408_v55, %v2394_v47  ;;  %v2373_v52 = vadd.f32 %v2372_v32, %v2358_v20  ;;  %v2336_v8 = vadd.f32 %v4041_v19, %v2335_v44  ;;  %v2396_v49 = vmul.f32 %v2359_v36, %v2333_v51 }
 0x966   :  { %v2362_v2 = vmul.f32 0.0, %v2344_v58 }
 0x967   :  { %v2374_v63 = vadd.f32 %v2373_v52, %v2359_v36  ;;  %v2410_v40 = vadd.f32 %v2409_v11, %v2395_v0  ;;  %v2360_v5 = vmul.f32 0.0, %v2336_v8 }
 0x968   :  { %v2399_v43 = vmul.f32 %v2362_v2, %v2344_v58 }
 0x969   :  { %v2411_v62 = vadd.f32 %v2410_v40, %v2396_v49  ;;  %v2375_v23 = vadd.f32 %v2374_v63, %v2360_v5  ;;  %v2397_v6 = vmul.f32 %v2360_v5, %v2336_v8 }
 0x96b   :  { %v2376_v9 = vadd.f32 %v2375_v23, %v2361_v56  ;;  %v2412_v53 = vadd.f32 %v2411_v62, %v2397_v6 }
 0x96d   :  { %v2377_v26 = vadd.f32 %v2376_v9, %v2362_v2  ;;  %v2413_v17 = vadd.f32 %v2412_v53, %v2398_v7 }
 0x96f   :  { %v2378_v45 = vrot.slane %v2377_v26, 4  ;;  %v2414_v13 = vadd.f32 %v2413_v17, %v2399_v43 }
 0x971   :  { %v2379_v28 = vadd.f32 %v2378_v45, %v2377_v26  ;;  %v2415_v27 = vrot.slane %v2414_v13, 4 }
 0x973   :  { %v2380_v19 = vrot.slane %v2379_v28, 2  ;;  %v2416_v1 = vadd.f32 %v2415_v27, %v2414_v13 }
 0x975   :  { %v2381_v25 = vadd.f32 %v2380_v19, %v2379_v28  ;;  %v2417_v39 = vrot.slane %v2416_v1, 2 }
 0x977   :  { %v2382_v61 = vrot.slane %v2381_v25, 1  ;;  %v2418_v31 = vadd.f32 %v2417_v39, %v2416_v1 }
 0x979   :  { %v2383_v33 = vadd.f32 %v2382_v61, %v2381_v25  ;;  %v2419_v41 = vrot.slane %v2418_v31, 1 }
 0x97b   :  { %v2420_v16 = vadd.f32 %v2419_v41, %v2418_v31  ;;  %v2421_v54 = vmul.f32 0.0625, %v2383_v33 }
 0x97d   :  { %v2422_v14 = vmul.f32 0.0625, %v2420_v16  ;;  %v2423_v48 = vmul.f32 %v2421_v54, %v2421_v54 }
 0x97f   :  { %v2424_v34 = vsub.f32 %v2422_v14, %v2423_v48 }
 0x981   :  { %v2425_v20 = vmax.f32 %v2424_v34, 0.0 }
 0x983   :  { %v2427_v18 = vadd.f32 1e-05, %v2425_v20 }
 0x985   :  { %3332 = vrsqrt.f32 %v2427_v18 }
 0x992   :  { %v3333_v38 = vpop.eup %3332 }
 0x993   :  { %v2429_v59 = vmul.f32 %v3333_v38, %v2426_v37 }
 0x995   :  { %v2431_v47 = vmul.f32 %v2429_v59, %v2421_v54  ;;  %v2436_v32 = vrot.slane %v2429_v59, %v3620_v3 }
 0x997   :  { %v2432_v55 = vsub.f32 %v2430_v46, %v2431_v47  ;;  %v2450_v0 = vmul.f32 %v2436_v32, %v2336_v8  ;;  %v2451_v44 = vmul.f32 %v2436_v32, %v2341_v29  ;;  %v2452_v11 = vmul.f32 %v2436_v32, %v2344_v58  ;;  %v2538_v46 = vld [vmem:[#allocation10 + $0x20] sm:$0xff] }
 0x998   :  { %v2449_v52 = vmul.f32 %v2436_v32, %v2333_v51  ;;  %v2445_v56 = vmul.f32 %v2436_v32, %v4089_v21  ;;  %v2446_v63 = vmul.f32 %v2436_v32, %v4102_v22  ;;  %v2447_v2 = vmul.f32 %v2436_v32, %v4092_v15 }
 0x999   :  { %v2456_v36 = vrot.slane %v2432_v55, %v3620_v3  ;;  %v2448_v8 = vmul.f32 %v2436_v32, %v4098_v4  ;;  %v2443_v45 = vmul.f32 %v2436_v32, %v4072_v57  ;;  %v2444_v13 = vmul.f32 %v2436_v32, %v4077_v24 }
 0x99a   :  { %v2441_v19 = vmul.f32 %v2436_v32, %v4068_v12  ;;  %v2442_v1 = vmul.f32 %v2436_v32, %v4081_v60  ;;  %v2439_v57 = vmul.f32 %v2436_v32, %v4045_v50  ;;  %v2440_v24 = vmul.f32 %v2436_v32, %v4051_v30 }
 0x99b   :  { %v2470_v49 = vadd.f32 %v2456_v36, %v2450_v0  ;;  %v2471_v40 = vadd.f32 %v2456_v36, %v2451_v44  ;;  %v2472_v5 = vadd.f32 %v2456_v36, %v2452_v11  ;;  %v2469_v62 = vadd.f32 %v2456_v36, %v2449_v52  ;;  %v2739_v11 = vld [vmem:[#allocation10 + $0x18] ss:$0 sm:$0xff] }
 0x99c   :  { %v2465_v23 = vadd.f32 %v2456_v36, %v2445_v56  ;;  %v2466_v6 = vadd.f32 %v2456_v36, %v2446_v63  ;;  %v2467_v3 = vadd.f32 %v2456_v36, %v2447_v2  ;;  %v2468_v43 = vadd.f32 %v2456_v36, %v2448_v8 }
 0x99d   :  { %v2487_v7 = vmax.f32 %v2471_v40, 0.0  ;;  %v2488_v9 = vmax.f32 %v2472_v5, 0.0  ;;  %v2486_v51 = vmax.f32 %v2470_v49, 0.0  ;;  %v2485_v21 = vmax.f32 %v2469_v62, 0.0 }
 0x99e   :  { %v2481_v29 = vmax.f32 %v2465_v23, 0.0  ;;  %v2482_v58 = vmax.f32 %v2466_v6, 0.0  ;;  %v2483_v17 = vmax.f32 %v2467_v3, 0.0  ;;  %v2484_v15 = vmax.f32 %v2468_v43, 0.0 }
 0x99f   :  { %v2496_v53 = vpack.c.bf16 %v2488_v9, %v2487_v7  ;;  %v2495_v26 = vpack.c.bf16 %v2486_v51, %v2485_v21  ;;  %v2463_v28 = vadd.f32 %v2456_v36, %v2443_v45  ;;  %v2464_v27 = vadd.f32 %v2456_v36, %v2444_v13 }
 0x9a0   :  { %v2493_v22 = vpack.c.bf16 %v2482_v58, %v2481_v29  ;;  %v2494_v4 = vpack.c.bf16 %v2484_v15, %v2483_v17  ;;  %v2461_v61 = vadd.f32 %v2456_v36, %v2441_v19  ;;  %v2462_v31 = vadd.f32 %v2456_v36, %v2442_v1 }
 0x9a1   :  { %3199 = vmatpush3.bf16.msra.mxu1 %v2496_v53  ;;  %v2479_v25 = vmax.f32 %v2463_v28, 0.0  ;;  %v2480_v39 = vmax.f32 %v2464_v27, 0.0  ;;  %v2459_v33 = vadd.f32 %v2456_v36, %v2439_v57  ;;  %v2460_v12 = vadd.f32 %v2456_v36, %v2440_v24 }
 0x9a2   :  { %3200 = vmatprep.subr.bf16.mxu1 %v3479_v10  ;;  %v2477_v16 = vmax.f32 %v2461_v61, 0.0  ;;  %v2478_v54 = vmax.f32 %v2462_v31, 0.0  ;;  %v2437_v60 = vmul.f32 %v2436_v32, %v4048_v42  ;;  %v2438_v14 = vmul.f32 %v2436_v32, %v4056_v35  ;;  %v2497_v42 = vld [vmem:[#allocation7] sm:$0xf]  ;;  %v3321_v35 = vld [vmem:[#allocation8 + $0x180] sm:$0xff]  }
 0x9a3   :  { %v2492_v41 = vpack.c.bf16 %v2480_v39, %v2479_v25  ;;  %v2475_v48 = vmax.f32 %v2459_v33, 0.0  ;;  %v2476_v50 = vmax.f32 %v2460_v12, 0.0  ;;  %3233 = vmatpush3.bf16.msra.mxu0 %v3321_v35 }
 0x9a4   :  { %v2491_v34 = vpack.c.bf16 %v2478_v54, %v2477_v16  ;;  %v2457_v20 = vadd.f32 %v2456_v36, %v2437_v60  ;;  %v2458_v18 = vadd.f32 %v2456_v36, %v2438_v14 }
 0x9a5   :  { %3201 = vmatpush3.bf16.msra.mxu1 %v2495_v26  ;;  %v2490_v30 = vpack.c.bf16 %v2476_v50, %v2475_v48 }
 0x9a6   :  { %3202 = vmatprep.subr.bf16.mxu1 %v3479_v10  ;;  %v2473_v37 = vmax.f32 %v2457_v20, 0.0  ;;  %v2474_v38 = vmax.f32 %v2458_v18, 0.0 }
 0x9a8   :  { %v2489_v59 = vpack.c.bf16 %v2474_v38, %v2473_v37 }
 0x9a9   :  { %3203 = vmatpush3.bf16.msra.mxu1 %v2494_v4 }
 0x9aa   :  { %3204 = vmatprep.subr.bf16.mxu1 %v3479_v10 }
 0x9ad   :  { %3205 = vmatpush3.bf16.msra.mxu1 %v2493_v22 }
 0x9ae   :  { %3206 = vmatprep.subr.bf16.mxu1 %v3479_v10 }
 0x9b1   :  { %3207 = vmatpush3.bf16.msra.mxu1 %v2492_v41 }
 0x9b2   :  { %3208 = vmatprep.subr.bf16.mxu1 %v3479_v10 }
 0x9b5   :  { %3209 = vmatpush3.bf16.msra.mxu1 %v2491_v34 }
 0x9b6   :  { %3210 = vmatprep.subr.bf16.mxu1 %v3479_v10 }
 0x9b9   :  { %3211 = vmatpush3.bf16.msra.mxu1 %v2490_v30 }
 0x9ba   :  { %3212 = vmatprep.subr.bf16.mxu1 %v3479_v10 }
 0x9bd   :  { %3213 = vmatpush3.bf16.msra.mxu1 %v2489_v59 }
 0x9c0   :  { %3215 = vmatmul.mubr.bf16.vlgmr.msra.gmra.mxu1 %v2497_v42 }
 0xa80   :  { %v2532_v47 = vpop.f32.mrf.mxu1 }
 0xa81   :  { %v2539_v32 = vmul.f32 %v2538_v46, %v2532_v47 }
 0xa82   :  { %v3216_v55 = vpop.f32.mrf.mxu1 }
 0xa83   :  { %v2540_v0 = vpack.c.bf16 %v2539_v32, %v2539_v32 }
 0xa84   :  { %v2535_v36 = vpop.f32.mrf.mxu1 }
 0xa85   :  { %3235 = vmatmul.mubr.bf16.vlgmr.msra.gmra.mxu0 %v2540_v0 }
 0xa86   :  { %v3217_v44 = vpop.f32.mrf.mxu1 }
 0xb45   :  { %v2645_v52 = vpop.f32.mrf.mxu0 }
 0xb46   :  { %v2646_v56 = vadd.f32 %v2739_v11, %v2645_v52 }
 0xb47   :  { %v3236_v10 = vpop.f32.mrf.mxu0 }
 0xb48   :  { %2651 = vst [vmem:[#allocation11] sm:$0xff] %v2646_v56 }
 0xb49   :  { %v2648_v63 = vpop.f32.mrf.mxu0 }
 0xb4a   :  { %3453 = shalt.err (!%p3450_p1)
}
 0xb4b   :  { %2661 = dma.vmem_to_hbm [thread:$0]  %s2659_s4, 128, %s4144_s5, [#allocation4]   ;;  %v3237_v49 = vpop.f32.mrf.mxu0 }
 0xb4c   :  { %3468 = dma.done.wait [#allocation4], 128  }
 0xb4d   :  { %3469 = vsyncadd [#allocation4], 4294967168 }
 0xb4e   :  { %2665 = vsyncpa [#allocation3], 1 }
 0xb4f   :  { %2666 = vsyncpa [#allocation6], 1 }
 0xb50   :  { %2667 = vsyncpa [#allocation9], 1 }
 0xb51   :  { %2668 = vsyncpa [#allocation4], 1 }

</bundles_post_ra>
